<compile_context>
chip_gen: v7x
topology: tpu7x:2x2x1
jax: 0.10.0
libtpu: 0.0.40
codegen_flags: <defaults>
</compile_context>

<pallas_src>
import functools

import jax
import jax.numpy as jnp
from jax.experimental import pallas as pl
from jax.experimental.pallas import tpu as pltpu


_MAX_TIME_TILE = 16          # timesteps per grid step (multiple of 8 when tiling)


def _round_up(x, m):
    return ((x + m - 1) // m) * m


def bilstm_max_kernel(x_ref, wih_ref, b_ref, whh_ref, out_ref,
                      xw_ref, h_ref, c_ref, m_ref,
                      *, seq_len, seq_tile, num_time_tiles, hidden_pad):
    """Grid (direction, time_tile).  x_ref: (B, Tt, D) f32; wih_ref: (D, 4Hg) bf16;
    b_ref: (1, 4Hg) f32; whh_ref: (Hg, 4Hg) bf16; out_ref: (B, Hg) f32.
    Gate order [i, f, o, g], each gate padded to Hg (multiple of 128) lanes."""
    d = pl.program_id(0)                     # 0 = forward, 1 = backward
    t = pl.program_id(1)                     # time-tile index (processing order)
    Tt = seq_tile
    nT = num_time_tiles
    Hg = hidden_pad
    need_mask = (Tt * nT) != seq_len         # ragged time (padded) tiles?

    # ---- init carried state at the first time tile of each direction -------
    @pl.when(t == 0)
    def _():
        h_ref[...] = jnp.zeros(h_ref.shape, h_ref.dtype)
        c_ref[...] = jnp.zeros(c_ref.shape, c_ref.dtype)
        m_ref[...] = jnp.full(m_ref.shape, -jnp.inf, m_ref.dtype)

    # ---- hoisted input projection for this tile (off the critical path) ----
    # Independent small-M MXU matmuls; results land in VMEM scratch so the
    # recurrence reads cheap aligned per-step slices instead of holding a big
    # traced value live across the whole loop.
    wih = wih_ref[...]                        # (D, 4Hg) bf16
    bias = b_ref[...]                         # (1, 4Hg) f32
    xb = x_ref[...].astype(jnp.bfloat16)      # (B, Tt, D)
    for s in range(Tt):
        xw_ref[s] = (jnp.dot(xb[:, s, :], wih,
                             preferred_element_type=jnp.float32) + bias)

    # ---- serial recurrence over this tile -----------------------------------
    whh = whh_ref[...]                        # (Hg, 4Hg) bf16 (only weights in vregs)
    h = h_ref[...]
    c = c_ref[...]
    m = m_ref[...]

    if need_mask:
        # Global tile index (the index_map already reversed tile order for d=1).
        tile_idx = d * (nT - 1 - t) + (1 - d) * t

    for s in range(Tt):
        # Within-tile time order: forward for d==0, reversed for d==1.
        idx = d * (Tt - 1 - s) + (1 - d) * s            # scalar row index
        pre = xw_ref[idx]                                # (B, 4Hg) f32
        gates = pre + jnp.dot(h.astype(jnp.bfloat16), whh,
                              preferred_element_type=jnp.float32)
        sg = jax.nn.sigmoid(gates[:, :3 * Hg])           # i, f, o in one EUP stream
        gg = jnp.tanh(gates[:, 3 * Hg:])                 # g gate
        i_g = sg[:, 0 * Hg:1 * Hg]
        f_g = sg[:, 1 * Hg:2 * Hg]
        o_g = sg[:, 2 * Hg:3 * Hg]
        c_new = f_g * c + i_g * gg
        h_new = o_g * jnp.tanh(c_new)
        m_new = jnp.maximum(m, h_new)
        if need_mask:
            valid = (tile_idx * Tt + idx) < seq_len      # skip padded timesteps
            c = jnp.where(valid, c_new, c)
            h = jnp.where(valid, h_new, h)
            m = jnp.where(valid, m_new, m)
        else:
            c, h, m = c_new, h_new, m_new

    h_ref[...] = h
    c_ref[...] = c
    m_ref[...] = m

    # ---- finalize: single lane-dense, 128-aligned store ---------------------
    @pl.when(t == nT - 1)
    def _():
        out_ref[...] = m


def _reorder_pad_gates_matrix(w, hg):
    """(4H, K) torch gate layout [i, f, g, o] -> (K, 4*hg), order [i, f, o, g],
    each gate block zero-padded from H to hg output lanes."""
    h = w.shape[0] // 4
    k = w.shape[1]
    i, f, g, o = jnp.split(w, 4, axis=0)
    out = jnp.zeros((4 * hg, k), w.dtype)
    for n, blk in enumerate((i, f, o, g)):
        out = out.at[n * hg:n * hg + h, :].set(blk)
    return out.T


def _reorder_pad_gates_bias(b, hg):
    h = b.shape[0] // 4
    i, f, g, o = jnp.split(b, 4)
    out = jnp.zeros((4 * hg,), b.dtype)
    for n, blk in enumerate((i, f, o, g)):
        out = out.at[n * hg:n * hg + h].set(blk)
    return out.reshape(1, 4 * hg)


@jax.jit
def lstm_model_forward(x_btd, params):
    """x_btd: (B, T, D) float32.  Returns (B, 2H) = max over time of BiLSTM output."""
    B, T, D = x_btd.shape
    H = params["whh_f"].shape[1]
    assert T >= 1
    Hg = _round_up(H, 128)              # per-gate lane padding -> aligned slices
    G = 4 * Hg

    # Time tiling: Tt must be a multiple of 8 (block sublane constraint) or == T.
    Tt = T if T <= _MAX_TIME_TILE else _MAX_TIME_TILE
    Tp = _round_up(T, Tt)
    nT = Tp // Tt
    if Tp != T:
        x_btd = jnp.pad(x_btd, ((0, 0), (0, Tp - T), (0, 0)))

    # Weights: reorder gates to [i, f, o, g], pad each gate to Hg lanes, stack
    # directions, cast matmul inputs to bf16 (f32 accumulation in-kernel).
    wih = jnp.stack([_reorder_pad_gates_matrix(params["wih_f"], Hg),
                     _reorder_pad_gates_matrix(params["wih_b"], Hg)]
                    ).astype(jnp.bfloat16)                        # (2, D, G)
    whh_f = jnp.zeros((Hg, G), jnp.float32).at[:H].set(
        _reorder_pad_gates_matrix(params["whh_f"], Hg))
    whh_b = jnp.zeros((Hg, G), jnp.float32).at[:H].set(
        _reorder_pad_gates_matrix(params["whh_b"], Hg))
    whh = jnp.stack([whh_f, whh_b]).astype(jnp.bfloat16)          # (2, Hg, G)
    bias = jnp.stack(
        [_reorder_pad_gates_bias(params["bih_f"] + params["bhh_f"], Hg),
         _reorder_pad_gates_bias(params["bih_b"] + params["bhh_b"], Hg)])  # (2,1,G)

    kernel = functools.partial(bilstm_max_kernel, seq_len=T, seq_tile=Tt,
                               num_time_tiles=nT, hidden_pad=Hg)

    cost = pl.CostEstimate(
        flops=2 * 2 * T * B * (D * 4 * H + H * 4 * H),
        transcendentals=2 * T * B * 5 * H,
        bytes_accessed=(B * Tp * D * 4 + 2 * (D + Hg) * G * 2
                        + 2 * G * 4 + 2 * B * Hg * 4))

    out = pl.pallas_call(
        kernel,
        out_shape=jax.ShapeDtypeStruct((2, B, Hg), jnp.float32),
        grid_spec=pltpu.PrefetchScalarGridSpec(
            num_scalar_prefetch=0,
            grid=(2, nT),                    # (direction, time tile)
            in_specs=[
                # x in its native (B, T, D) layout; backward direction gets the
                # reversed tile order straight from the index_map.
                pl.BlockSpec((B, Tt, D),
                             lambda d, t: (0, d * (nT - 1 - t) + (1 - d) * t, 0)),
                pl.BlockSpec((None, D, G), lambda d, t: (d, 0, 0)),
                pl.BlockSpec((None, 1, G), lambda d, t: (d, 0, 0)),
                pl.BlockSpec((None, Hg, G), lambda d, t: (d, 0, 0)),
            ],
            out_specs=pl.BlockSpec((None, B, Hg), lambda d, t: (d, 0, 0)),
            scratch_shapes=[
                pltpu.VMEM((Tt, B, G), jnp.float32),   # hoisted projection
                pltpu.VMEM((B, Hg), jnp.float32),      # h (carried)
                pltpu.VMEM((B, Hg), jnp.float32),      # c (carried)
                pltpu.VMEM((B, Hg), jnp.float32),      # running max (carried)
            ]),
        compiler_params=pltpu.CompilerParams(
            dimension_semantics=("parallel", "arbitrary"),
            vmem_limit_bytes=32 * 1024 * 1024),
        cost_estimate=cost,
    )(x_btd, wih, bias, whh)

    # (2, B, Hg) -> (B, 2H): [max_t h_fwd, max_t h_bwd]
    return jnp.concatenate([out[0, :, :H], out[1, :, :H]], axis=-1)


def reference_forward(x_btd, params):
    """Pure-JAX f32 reference matching torch.nn.LSTM semantics (zero init states)."""
    B, T, D = x_btd.shape
    H = params["whh_f"].shape[1]
    hp = jax.lax.Precision.HIGHEST

    def run_dir(wih, whh, bih, bhh, reverse):
        h = jnp.zeros((B, H), jnp.float32)
        c = jnp.zeros((B, H), jnp.float32)
        outs = []
        ts = range(T - 1, -1, -1) if reverse else range(T)
        for t in ts:
            g = (jnp.dot(x_btd[:, t, :], wih.T, precision=hp)
                 + jnp.dot(h, whh.T, precision=hp) + bih + bhh)
            i = jax.nn.sigmoid(g[:, 0 * H:1 * H])
            f = jax.nn.sigmoid(g[:, 1 * H:2 * H])
            gg = jnp.tanh(g[:, 2 * H:3 * H])
            o = jax.nn.sigmoid(g[:, 3 * H:4 * H])
            c = f * c + i * gg
            h = o * jnp.tanh(c)
            outs.append(h)
        return jnp.stack(outs, axis=1)   # ordering irrelevant for the max

    out_f = run_dir(params["wih_f"], params["whh_f"], params["bih_f"],
                    params["bhh_f"], reverse=False)
    out_b = run_dir(params["wih_b"], params["whh_b"], params["bih_b"],
                    params["bhh_b"], reverse=True)
    return jnp.concatenate([out_f, out_b], axis=-1).max(axis=1)


def init_params(key, input_size, hidden_size):
    """Deterministic init mirroring nn.LSTM's U(-1/sqrt(H), 1/sqrt(H))."""
    k = 1.0 / jnp.sqrt(jnp.float32(hidden_size))
    names_shapes = [
        ("wih_f", (4 * hidden_size, input_size)),
        ("whh_f", (4 * hidden_size, hidden_size)),
        ("bih_f", (4 * hidden_size,)),
        ("bhh_f", (4 * hidden_size,)),
        ("wih_b", (4 * hidden_size, input_size)),
        ("whh_b", (4 * hidden_size, hidden_size)),
        ("bih_b", (4 * hidden_size,)),
        ("bhh_b", (4 * hidden_size,)),
    ]
    params = {}
    for name, shape in names_shapes:
        key, sub = jax.random.split(key)
        params[name] = jax.random.uniform(sub, shape, jnp.float32, -k, k)
    return params


if __name__ == "__main__":
    # small shapes consistent with the module's forward:
    # batch=2, seq=8, input_size=64, hidden_size=32, bidirectional -> output (2, 64)
    B, T, D, H = 2, 8, 64, 32

    key = jax.random.PRNGKey(0)
    key, xk = jax.random.split(key)
    x = jax.random.normal(xk, (B, T, D), jnp.float32)
    params = init_params(key, D, H)

    out = jax.block_until_ready(lstm_model_forward(x, params))
    ref = jax.block_until_ready(reference_forward(x, params))

    assert out.shape == (B, 2 * H), out.shape
    max_err = float(jnp.max(jnp.abs(out - ref)))
    # bf16 matmul inputs (f32 accumulation) vs. an f32-HIGHEST reference:
    # bf16-class tolerance.
    assert jnp.allclose(out, ref, rtol=3e-2, atol=3e-2), max_err

    print("KERNEL_OK")
</pallas_src>

<mosaic_0001>
module attributes {stable_mosaic.version = 11 : i64} {
  func.func @bilstm_max_kernel(%arg0: i32, %arg1: i32, %arg2: memref<2x8x64xf32, #tpu.memory_space<vmem>>, %arg3: memref<1x64x512xbf16, #tpu.memory_space<vmem>>, %arg4: memref<1x1x512xf32, #tpu.memory_space<vmem>>, %arg5: memref<1x128x512xbf16, #tpu.memory_space<vmem>>, %arg6: memref<1x2x128xf32, #tpu.memory_space<vmem>>, %arg7: memref<8x2x512xf32, #tpu.memory_space<vmem>>, %arg8: memref<2x128xf32, #tpu.memory_space<vmem>>, %arg9: memref<2x128xf32, #tpu.memory_space<vmem>>, %arg10: memref<2x128xf32, #tpu.memory_space<vmem>>) attributes {dimension_semantics = [#tpu.dimension_semantics<parallel>, #tpu.dimension_semantics<arbitrary>], iteration_bounds = array<i64: 2, 1>, scalar_prefetch = 0 : i64, scratch_operands = 4 : i64, tpu.core_type = #tpu.core_type<tc>, window_params = [{transform_indices = @transform_0, window_bounds = array<i64: 2, 8, 64>}, {transform_indices = @transform_1, window_bounds = array<i64: 1, 64, 512>}, {transform_indices = @transform_2, window_bounds = array<i64: 1, 1, 512>}, {transform_indices = @transform_3, window_bounds = array<i64: 1, 128, 512>}, {transform_indices = @transform_4, window_bounds = array<i64: 1, 2, 128>}]} {
    %c0_i32 = arith.constant 0 : i32
    %0 = arith.cmpi eq, %arg1, %c0_i32 : i32
    %1 = arith.extui %0 : i1 to i32
    %c0_i32_0 = arith.constant 0 : i32
    %2 = arith.cmpi ne, %1, %c0_i32_0 : i32
    scf.if %2 {
      %cst_99 = arith.constant 0.000000e+00 : f32
      %300 = vector.broadcast %cst_99 : f32 to vector<2x128xf32>
      %c0_100 = arith.constant 0 : index
      %c0_101 = arith.constant 0 : index
      %301 = vector.load %arg8[%c0_100, %c0_101] : memref<2x128xf32, #tpu.memory_space<vmem>>, vector<2x128xf32>
      tpu.vector_store %arg8[%c0_100, %c0_101], %300 {strides = array<i32>} : memref<2x128xf32, #tpu.memory_space<vmem>>, vector<2x128xf32>,
      %cst_102 = arith.constant 0.000000e+00 : f32
      %302 = vector.broadcast %cst_102 : f32 to vector<2x128xf32>
      %c0_103 = arith.constant 0 : index
      %c0_104 = arith.constant 0 : index
      %303 = vector.load %arg9[%c0_103, %c0_104] : memref<2x128xf32, #tpu.memory_space<vmem>>, vector<2x128xf32>
      tpu.vector_store %arg9[%c0_103, %c0_104], %302 {strides = array<i32>} : memref<2x128xf32, #tpu.memory_space<vmem>>, vector<2x128xf32>,
      %cst_105 = arith.constant 0xFF800000 : f32
      %304 = vector.broadcast %cst_105 : f32 to vector<2x128xf32>
      %c0_106 = arith.constant 0 : index
      %c0_107 = arith.constant 0 : index
      %305 = vector.load %arg10[%c0_106, %c0_107] : memref<2x128xf32, #tpu.memory_space<vmem>>, vector<2x128xf32>
      tpu.vector_store %arg10[%c0_106, %c0_107], %304 {strides = array<i32>} : memref<2x128xf32, #tpu.memory_space<vmem>>, vector<2x128xf32>,
    } else {
    }
    %c0 = arith.constant 0 : index
    %c0_1 = arith.constant 0 : index
    %c0_2 = arith.constant 0 : index
    %3 = vector.load %arg3[%c0, %c0_1, %c0_2] : memref<1x64x512xbf16, #tpu.memory_space<vmem>>, vector<1x64x512xbf16>
    %4 = vector.shape_cast %3 : vector<1x64x512xbf16> to vector<64x512xbf16>
    %c0_3 = arith.constant 0 : index
    %c0_4 = arith.constant 0 : index
    %c0_5 = arith.constant 0 : index
    %5 = vector.load %arg4[%c0_3, %c0_4, %c0_5] : memref<1x1x512xf32, #tpu.memory_space<vmem>>, vector<1x1x512xf32>
    %6 = vector.shape_cast %5 : vector<1x1x512xf32> to vector<1x512xf32>
    %c0_6 = arith.constant 0 : index
    %c0_7 = arith.constant 0 : index
    %c0_8 = arith.constant 0 : index
    %7 = vector.load %arg2[%c0_6, %c0_7, %c0_8] : memref<2x8x64xf32, #tpu.memory_space<vmem>>, vector<2x8x64xf32>
    %8 = arith.truncf %7 : vector<2x8x64xf32> to vector<2x8x64xbf16>
    %9 = vector.extract_strided_slice %8 {offsets = [0, 0, 0], sizes = [2, 1, 64], strides = [1, 1, 1]} : vector<2x8x64xbf16> to vector<2x1x64xbf16>
    %10 = vector.shape_cast %9 : vector<2x1x64xbf16> to vector<2x64xbf16>
    %cst = arith.constant dense<0.000000e+00> : vector<2x512xf32>
    %11 = tpu.matmul %10, %4, %cst {dimension_numbers = #tpu.dot_dimension_numbers<[1], [0], [0], [1], [0, 0, 1, 1], [], []>} : vector<2x64xbf16>, vector<64x512xbf16>, vector<2x512xf32> -> vector<2x512xf32>
    %12 = vector.broadcast %6 : vector<1x512xf32> to vector<2x512xf32>
    %13 = arith.addf %11, %12 : vector<2x512xf32>
    %c0_9 = arith.constant 0 : index
    %c0_10 = arith.constant 0 : index
    %c0_11 = arith.constant 0 : index
    %14 = vector.load %arg7[%c0_9, %c0_10, %c0_11] : memref<8x2x512xf32, #tpu.memory_space<vmem>>, vector<1x2x512xf32>
    %15 = vector.shape_cast %14 : vector<1x2x512xf32> to vector<2x512xf32>
    %16 = vector.shape_cast %13 : vector<2x512xf32> to vector<1x2x512xf32>
    tpu.vector_store %arg7[%c0_9, %c0_10, %c0_11], %16 {strides = array<i32>} : memref<8x2x512xf32, #tpu.memory_space<vmem>>, vector<1x2x512xf32>,
    %17 = vector.extract_strided_slice %8 {offsets = [0, 1, 0], sizes = [2, 1, 64], strides = [1, 1, 1]} : vector<2x8x64xbf16> to vector<2x1x64xbf16>
    %18 = vector.shape_cast %17 : vector<2x1x64xbf16> to vector<2x64xbf16>
    %cst_12 = arith.constant dense<0.000000e+00> : vector<2x512xf32>
    %19 = tpu.matmul %18, %4, %cst_12 {dimension_numbers = #tpu.dot_dimension_numbers<[1], [0], [0], [1], [0, 0, 1, 1], [], []>} : vector<2x64xbf16>, vector<64x512xbf16>, vector<2x512xf32> -> vector<2x512xf32>
    %20 = vector.broadcast %6 : vector<1x512xf32> to vector<2x512xf32>
    %21 = arith.addf %19, %20 : vector<2x512xf32>
    %c1 = arith.constant 1 : index
    %c0_13 = arith.constant 0 : index
    %c0_14 = arith.constant 0 : index
    %22 = vector.load %arg7[%c1, %c0_13, %c0_14] : memref<8x2x512xf32, #tpu.memory_space<vmem>>, vector<1x2x512xf32>
    %23 = vector.shape_cast %22 : vector<1x2x512xf32> to vector<2x512xf32>
    %24 = vector.shape_cast %21 : vector<2x512xf32> to vector<1x2x512xf32>
    tpu.vector_store %arg7[%c1, %c0_13, %c0_14], %24 {strides = array<i32>} : memref<8x2x512xf32, #tpu.memory_space<vmem>>, vector<1x2x512xf32>,
    %25 = vector.extract_strided_slice %8 {offsets = [0, 2, 0], sizes = [2, 1, 64], strides = [1, 1, 1]} : vector<2x8x64xbf16> to vector<2x1x64xbf16>
    %26 = vector.shape_cast %25 : vector<2x1x64xbf16> to vector<2x64xbf16>
    %cst_15 = arith.constant dense<0.000000e+00> : vector<2x512xf32>
    %27 = tpu.matmul %26, %4, %cst_15 {dimension_numbers = #tpu.dot_dimension_numbers<[1], [0], [0], [1], [0, 0, 1, 1], [], []>} : vector<2x64xbf16>, vector<64x512xbf16>, vector<2x512xf32> -> vector<2x512xf32>
    %28 = vector.broadcast %6 : vector<1x512xf32> to vector<2x512xf32>
    %29 = arith.addf %27, %28 : vector<2x512xf32>
    %c2 = arith.constant 2 : index
    %c0_16 = arith.constant 0 : index
    %c0_17 = arith.constant 0 : index
    %30 = vector.load %arg7[%c2, %c0_16, %c0_17] : memref<8x2x512xf32, #tpu.memory_space<vmem>>, vector<1x2x512xf32>
    %31 = vector.shape_cast %30 : vector<1x2x512xf32> to vector<2x512xf32>
    %32 = vector.shape_cast %29 : vector<2x512xf32> to vector<1x2x512xf32>
    tpu.vector_store %arg7[%c2, %c0_16, %c0_17], %32 {strides = array<i32>} : memref<8x2x512xf32, #tpu.memory_space<vmem>>, vector<1x2x512xf32>,
    %33 = vector.extract_strided_slice %8 {offsets = [0, 3, 0], sizes = [2, 1, 64], strides = [1, 1, 1]} : vector<2x8x64xbf16> to vector<2x1x64xbf16>
    %34 = vector.shape_cast %33 : vector<2x1x64xbf16> to vector<2x64xbf16>
    %cst_18 = arith.constant dense<0.000000e+00> : vector<2x512xf32>
    %35 = tpu.matmul %34, %4, %cst_18 {dimension_numbers = #tpu.dot_dimension_numbers<[1], [0], [0], [1], [0, 0, 1, 1], [], []>} : vector<2x64xbf16>, vector<64x512xbf16>, vector<2x512xf32> -> vector<2x512xf32>
    %36 = vector.broadcast %6 : vector<1x512xf32> to vector<2x512xf32>
    %37 = arith.addf %35, %36 : vector<2x512xf32>
    %c3 = arith.constant 3 : index
    %c0_19 = arith.constant 0 : index
    %c0_20 = arith.constant 0 : index
    %38 = vector.load %arg7[%c3, %c0_19, %c0_20] : memref<8x2x512xf32, #tpu.memory_space<vmem>>, vector<1x2x512xf32>
    %39 = vector.shape_cast %38 : vector<1x2x512xf32> to vector<2x512xf32>
    %40 = vector.shape_cast %37 : vector<2x512xf32> to vector<1x2x512xf32>
    tpu.vector_store %arg7[%c3, %c0_19, %c0_20], %40 {strides = array<i32>} : memref<8x2x512xf32, #tpu.memory_space<vmem>>, vector<1x2x512xf32>,
    %41 = vector.extract_strided_slice %8 {offsets = [0, 4, 0], sizes = [2, 1, 64], strides = [1, 1, 1]} : vector<2x8x64xbf16> to vector<2x1x64xbf16>
    %42 = vector.shape_cast %41 : vector<2x1x64xbf16> to vector<2x64xbf16>
    %cst_21 = arith.constant dense<0.000000e+00> : vector<2x512xf32>
    %43 = tpu.matmul %42, %4, %cst_21 {dimension_numbers = #tpu.dot_dimension_numbers<[1], [0], [0], [1], [0, 0, 1, 1], [], []>} : vector<2x64xbf16>, vector<64x512xbf16>, vector<2x512xf32> -> vector<2x512xf32>
    %44 = vector.broadcast %6 : vector<1x512xf32> to vector<2x512xf32>
    %45 = arith.addf %43, %44 : vector<2x512xf32>
    %c4 = arith.constant 4 : index
    %c0_22 = arith.constant 0 : index
    %c0_23 = arith.constant 0 : index
    %46 = vector.load %arg7[%c4, %c0_22, %c0_23] : memref<8x2x512xf32, #tpu.memory_space<vmem>>, vector<1x2x512xf32>
    %47 = vector.shape_cast %46 : vector<1x2x512xf32> to vector<2x512xf32>
    %48 = vector.shape_cast %45 : vector<2x512xf32> to vector<1x2x512xf32>
    tpu.vector_store %arg7[%c4, %c0_22, %c0_23], %48 {strides = array<i32>} : memref<8x2x512xf32, #tpu.memory_space<vmem>>, vector<1x2x512xf32>,
    %49 = vector.extract_strided_slice %8 {offsets = [0, 5, 0], sizes = [2, 1, 64], strides = [1, 1, 1]} : vector<2x8x64xbf16> to vector<2x1x64xbf16>
    %50 = vector.shape_cast %49 : vector<2x1x64xbf16> to vector<2x64xbf16>
    %cst_24 = arith.constant dense<0.000000e+00> : vector<2x512xf32>
    %51 = tpu.matmul %50, %4, %cst_24 {dimension_numbers = #tpu.dot_dimension_numbers<[1], [0], [0], [1], [0, 0, 1, 1], [], []>} : vector<2x64xbf16>, vector<64x512xbf16>, vector<2x512xf32> -> vector<2x512xf32>
    %52 = vector.broadcast %6 : vector<1x512xf32> to vector<2x512xf32>
    %53 = arith.addf %51, %52 : vector<2x512xf32>
    %c5 = arith.constant 5 : index
    %c0_25 = arith.constant 0 : index
    %c0_26 = arith.constant 0 : index
    %54 = vector.load %arg7[%c5, %c0_25, %c0_26] : memref<8x2x512xf32, #tpu.memory_space<vmem>>, vector<1x2x512xf32>
    %55 = vector.shape_cast %54 : vector<1x2x512xf32> to vector<2x512xf32>
    %56 = vector.shape_cast %53 : vector<2x512xf32> to vector<1x2x512xf32>
    tpu.vector_store %arg7[%c5, %c0_25, %c0_26], %56 {strides = array<i32>} : memref<8x2x512xf32, #tpu.memory_space<vmem>>, vector<1x2x512xf32>,
    %57 = vector.extract_strided_slice %8 {offsets = [0, 6, 0], sizes = [2, 1, 64], strides = [1, 1, 1]} : vector<2x8x64xbf16> to vector<2x1x64xbf16>
    %58 = vector.shape_cast %57 : vector<2x1x64xbf16> to vector<2x64xbf16>
    %cst_27 = arith.constant dense<0.000000e+00> : vector<2x512xf32>
    %59 = tpu.matmul %58, %4, %cst_27 {dimension_numbers = #tpu.dot_dimension_numbers<[1], [0], [0], [1], [0, 0, 1, 1], [], []>} : vector<2x64xbf16>, vector<64x512xbf16>, vector<2x512xf32> -> vector<2x512xf32>
    %60 = vector.broadcast %6 : vector<1x512xf32> to vector<2x512xf32>
    %61 = arith.addf %59, %60 : vector<2x512xf32>
    %c6 = arith.constant 6 : index
    %c0_28 = arith.constant 0 : index
    %c0_29 = arith.constant 0 : index
    %62 = vector.load %arg7[%c6, %c0_28, %c0_29] : memref<8x2x512xf32, #tpu.memory_space<vmem>>, vector<1x2x512xf32>
    %63 = vector.shape_cast %62 : vector<1x2x512xf32> to vector<2x512xf32>
    %64 = vector.shape_cast %61 : vector<2x512xf32> to vector<1x2x512xf32>
    tpu.vector_store %arg7[%c6, %c0_28, %c0_29], %64 {strides = array<i32>} : memref<8x2x512xf32, #tpu.memory_space<vmem>>, vector<1x2x512xf32>,
    %65 = vector.extract_strided_slice %8 {offsets = [0, 7, 0], sizes = [2, 1, 64], strides = [1, 1, 1]} : vector<2x8x64xbf16> to vector<2x1x64xbf16>
    %66 = vector.shape_cast %65 : vector<2x1x64xbf16> to vector<2x64xbf16>
    %cst_30 = arith.constant dense<0.000000e+00> : vector<2x512xf32>
    %67 = tpu.matmul %66, %4, %cst_30 {dimension_numbers = #tpu.dot_dimension_numbers<[1], [0], [0], [1], [0, 0, 1, 1], [], []>} : vector<2x64xbf16>, vector<64x512xbf16>, vector<2x512xf32> -> vector<2x512xf32>
    %68 = vector.broadcast %6 : vector<1x512xf32> to vector<2x512xf32>
    %69 = arith.addf %67, %68 : vector<2x512xf32>
    %c7 = arith.constant 7 : index
    %c0_31 = arith.constant 0 : index
    %c0_32 = arith.constant 0 : index
    %70 = vector.load %arg7[%c7, %c0_31, %c0_32] : memref<8x2x512xf32, #tpu.memory_space<vmem>>, vector<1x2x512xf32>
    %71 = vector.shape_cast %70 : vector<1x2x512xf32> to vector<2x512xf32>
    %72 = vector.shape_cast %69 : vector<2x512xf32> to vector<1x2x512xf32>
    tpu.vector_store %arg7[%c7, %c0_31, %c0_32], %72 {strides = array<i32>} : memref<8x2x512xf32, #tpu.memory_space<vmem>>, vector<1x2x512xf32>,
    %c0_33 = arith.constant 0 : index
    %c0_34 = arith.constant 0 : index
    %c0_35 = arith.constant 0 : index
    %73 = vector.load %arg5[%c0_33, %c0_34, %c0_35] : memref<1x128x512xbf16, #tpu.memory_space<vmem>>, vector<1x128x512xbf16>
    %74 = vector.shape_cast %73 : vector<1x128x512xbf16> to vector<128x512xbf16>
    %c0_36 = arith.constant 0 : index
    %c0_37 = arith.constant 0 : index
    %75 = vector.load %arg8[%c0_36, %c0_37] : memref<2x128xf32, #tpu.memory_space<vmem>>, vector<2x128xf32>
    %c0_38 = arith.constant 0 : index
    %c0_39 = arith.constant 0 : index
    %76 = vector.load %arg9[%c0_38, %c0_39] : memref<2x128xf32, #tpu.memory_space<vmem>>, vector<2x128xf32>
    %c0_40 = arith.constant 0 : index
    %c0_41 = arith.constant 0 : index
    %77 = vector.load %arg10[%c0_40, %c0_41] : memref<2x128xf32, #tpu.memory_space<vmem>>, vector<2x128xf32>
    %c7_i32 = arith.constant 7 : i32
    %78 = arith.muli %arg0, %c7_i32 : i32
    %c1_i32 = arith.constant 1 : i32
    %79 = arith.subi %c1_i32, %arg0 : i32
    %c0_i32_42 = arith.constant 0 : i32
    %80 = arith.muli %79, %c0_i32_42 : i32
    %81 = arith.addi %78, %80 : i32
    %82 = arith.index_cast %81 : i32 to index
    %c0_43 = arith.constant 0 : index
    %c0_44 = arith.constant 0 : index
    %83 = vector.load %arg7[%82, %c0_43, %c0_44] : memref<8x2x512xf32, #tpu.memory_space<vmem>>, vector<1x2x512xf32>
    %84 = vector.shape_cast %83 : vector<1x2x512xf32> to vector<2x512xf32>
    %85 = arith.truncf %75 : vector<2x128xf32> to vector<2x128xbf16>
    %cst_45 = arith.constant dense<0.000000e+00> : vector<2x512xf32>
    %86 = tpu.matmul %85, %74, %cst_45 {dimension_numbers = #tpu.dot_dimension_numbers<[1], [0], [0], [1], [0, 0, 1, 1], [], []>} : vector<2x128xbf16>, vector<128x512xbf16>, vector<2x512xf32> -> vector<2x512xf32>
    %87 = arith.addf %84, %86 : vector<2x512xf32>
    %88 = vector.extract_strided_slice %87 {offsets = [0, 0], sizes = [2, 384], strides = [1, 1]} : vector<2x512xf32> to vector<2x384xf32>
    %89 = arith.negf %88 : vector<2x384xf32>
    %90 = math.exp %89 : vector<2x384xf32>
    %cst_46 = arith.constant 1.000000e+00 : f32
    %91 = vector.broadcast %cst_46 : f32 to vector<2x384xf32>
    %92 = arith.addf %91, %90 : vector<2x384xf32>
    %93 = arith.divf %91, %92 : vector<2x384xf32>
    %94 = vector.extract_strided_slice %87 {offsets = [0, 384], sizes = [2, 128], strides = [1, 1]} : vector<2x512xf32> to vector<2x128xf32>
    %95 = math.tanh %94 : vector<2x128xf32>
    %96 = vector.extract_strided_slice %93 {offsets = [0, 0], sizes = [2, 128], strides = [1, 1]} : vector<2x384xf32> to vector<2x128xf32>
    %97 = vector.extract_strided_slice %93 {offsets = [0, 128], sizes = [2, 128], strides = [1, 1]} : vector<2x384xf32> to vector<2x128xf32>
    %98 = vector.extract_strided_slice %93 {offsets = [0, 256], sizes = [2, 128], strides = [1, 1]} : vector<2x384xf32> to vector<2x128xf32>
    %99 = arith.mulf %97, %76 : vector<2x128xf32>
    %100 = arith.mulf %96, %95 : vector<2x128xf32>
    %101 = arith.addf %99, %100 : vector<2x128xf32>
    %102 = math.tanh %101 : vector<2x128xf32>
    %103 = arith.mulf %98, %102 : vector<2x128xf32>
    %104 = arith.maximumf %77, %103 : vector<2x128xf32>
    %c6_i32 = arith.constant 6 : i32
    %105 = arith.muli %arg0, %c6_i32 : i32
    %c1_i32_47 = arith.constant 1 : i32
    %106 = arith.subi %c1_i32_47, %arg0 : i32
    %c1_i32_48 = arith.constant 1 : i32
    %107 = arith.muli %106, %c1_i32_48 : i32
    %108 = arith.addi %105, %107 : i32
    %109 = arith.index_cast %108 : i32 to index
    %c0_49 = arith.constant 0 : index
    %c0_50 = arith.constant 0 : index
    %110 = vector.load %arg7[%109, %c0_49, %c0_50] : memref<8x2x512xf32, #tpu.memory_space<vmem>>, vector<1x2x512xf32>
    %111 = vector.shape_cast %110 : vector<1x2x512xf32> to vector<2x512xf32>
    %112 = arith.truncf %103 : vector<2x128xf32> to vector<2x128xbf16>
    %cst_51 = arith.constant dense<0.000000e+00> : vector<2x512xf32>
    %113 = tpu.matmul %112, %74, %cst_51 {dimension_numbers = #tpu.dot_dimension_numbers<[1], [0], [0], [1], [0, 0, 1, 1], [], []>} : vector<2x128xbf16>, vector<128x512xbf16>, vector<2x512xf32> -> vector<2x512xf32>
    %114 = arith.addf %111, %113 : vector<2x512xf32>
    %115 = vector.extract_strided_slice %114 {offsets = [0, 0], sizes = [2, 384], strides = [1, 1]} : vector<2x512xf32> to vector<2x384xf32>
    %116 = arith.negf %115 : vector<2x384xf32>
    %117 = math.exp %116 : vector<2x384xf32>
    %cst_52 = arith.constant 1.000000e+00 : f32
    %118 = vector.broadcast %cst_52 : f32 to vector<2x384xf32>
    %119 = arith.addf %118, %117 : vector<2x384xf32>
    %120 = arith.divf %118, %119 : vector<2x384xf32>
    %121 = vector.extract_strided_slice %114 {offsets = [0, 384], sizes = [2, 128], strides = [1, 1]} : vector<2x512xf32> to vector<2x128xf32>
    %122 = math.tanh %121 : vector<2x128xf32>
    %123 = vector.extract_strided_slice %120 {offsets = [0, 0], sizes = [2, 128], strides = [1, 1]} : vector<2x384xf32> to vector<2x128xf32>
    %124 = vector.extract_strided_slice %120 {offsets = [0, 128], sizes = [2, 128], strides = [1, 1]} : vector<2x384xf32> to vector<2x128xf32>
    %125 = vector.extract_strided_slice %120 {offsets = [0, 256], sizes = [2, 128], strides = [1, 1]} : vector<2x384xf32> to vector<2x128xf32>
    %126 = arith.mulf %124, %101 : vector<2x128xf32>
    %127 = arith.mulf %123, %122 : vector<2x128xf32>
    %128 = arith.addf %126, %127 : vector<2x128xf32>
    %129 = math.tanh %128 : vector<2x128xf32>
    %130 = arith.mulf %125, %129 : vector<2x128xf32>
    %131 = arith.maximumf %104, %130 : vector<2x128xf32>
    %c5_i32 = arith.constant 5 : i32
    %132 = arith.muli %arg0, %c5_i32 : i32
    %c1_i32_53 = arith.constant 1 : i32
    %133 = arith.subi %c1_i32_53, %arg0 : i32
    %c2_i32 = arith.constant 2 : i32
    %134 = arith.muli %133, %c2_i32 : i32
    %135 = arith.addi %132, %134 : i32
    %136 = arith.index_cast %135 : i32 to index
    %c0_54 = arith.constant 0 : index
    %c0_55 = arith.constant 0 : index
    %137 = vector.load %arg7[%136, %c0_54, %c0_55] : memref<8x2x512xf32, #tpu.memory_space<vmem>>, vector<1x2x512xf32>
    %138 = vector.shape_cast %137 : vector<1x2x512xf32> to vector<2x512xf32>
    %139 = arith.truncf %130 : vector<2x128xf32> to vector<2x128xbf16>
    %cst_56 = arith.constant dense<0.000000e+00> : vector<2x512xf32>
    %140 = tpu.matmul %139, %74, %cst_56 {dimension_numbers = #tpu.dot_dimension_numbers<[1], [0], [0], [1], [0, 0, 1, 1], [], []>} : vector<2x128xbf16>, vector<128x512xbf16>, vector<2x512xf32> -> vector<2x512xf32>
    %141 = arith.addf %138, %140 : vector<2x512xf32>
    %142 = vector.extract_strided_slice %141 {offsets = [0, 0], sizes = [2, 384], strides = [1, 1]} : vector<2x512xf32> to vector<2x384xf32>
    %143 = arith.negf %142 : vector<2x384xf32>
    %144 = math.exp %143 : vector<2x384xf32>
    %cst_57 = arith.constant 1.000000e+00 : f32
    %145 = vector.broadcast %cst_57 : f32 to vector<2x384xf32>
    %146 = arith.addf %145, %144 : vector<2x384xf32>
    %147 = arith.divf %145, %146 : vector<2x384xf32>
    %148 = vector.extract_strided_slice %141 {offsets = [0, 384], sizes = [2, 128], strides = [1, 1]} : vector<2x512xf32> to vector<2x128xf32>
    %149 = math.tanh %148 : vector<2x128xf32>
    %150 = vector.extract_strided_slice %147 {offsets = [0, 0], sizes = [2, 128], strides = [1, 1]} : vector<2x384xf32> to vector<2x128xf32>
    %151 = vector.extract_strided_slice %147 {offsets = [0, 128], sizes = [2, 128], strides = [1, 1]} : vector<2x384xf32> to vector<2x128xf32>
    %152 = vector.extract_strided_slice %147 {offsets = [0, 256], sizes = [2, 128], strides = [1, 1]} : vector<2x384xf32> to vector<2x128xf32>
    %153 = arith.mulf %151, %128 : vector<2x128xf32>
    %154 = arith.mulf %150, %149 : vector<2x128xf32>
    %155 = arith.addf %153, %154 : vector<2x128xf32>
    %156 = math.tanh %155 : vector<2x128xf32>
    %157 = arith.mulf %152, %156 : vector<2x128xf32>
    %158 = arith.maximumf %131, %157 : vector<2x128xf32>
    %c4_i32 = arith.constant 4 : i32
    %159 = arith.muli %arg0, %c4_i32 : i32
    %c1_i32_58 = arith.constant 1 : i32
    %160 = arith.subi %c1_i32_58, %arg0 : i32
    %c3_i32 = arith.constant 3 : i32
    %161 = arith.muli %160, %c3_i32 : i32
    %162 = arith.addi %159, %161 : i32
    %163 = arith.index_cast %162 : i32 to index
    %c0_59 = arith.constant 0 : index
    %c0_60 = arith.constant 0 : index
    %164 = vector.load %arg7[%163, %c0_59, %c0_60] : memref<8x2x512xf32, #tpu.memory_space<vmem>>, vector<1x2x512xf32>
    %165 = vector.shape_cast %164 : vector<1x2x512xf32> to vector<2x512xf32>
    %166 = arith.truncf %157 : vector<2x128xf32> to vector<2x128xbf16>
    %cst_61 = arith.constant dense<0.000000e+00> : vector<2x512xf32>
    %167 = tpu.matmul %166, %74, %cst_61 {dimension_numbers = #tpu.dot_dimension_numbers<[1], [0], [0], [1], [0, 0, 1, 1], [], []>} : vector<2x128xbf16>, vector<128x512xbf16>, vector<2x512xf32> -> vector<2x512xf32>
    %168 = arith.addf %165, %167 : vector<2x512xf32>
    %169 = vector.extract_strided_slice %168 {offsets = [0, 0], sizes = [2, 384], strides = [1, 1]} : vector<2x512xf32> to vector<2x384xf32>
    %170 = arith.negf %169 : vector<2x384xf32>
    %171 = math.exp %170 : vector<2x384xf32>
    %cst_62 = arith.constant 1.000000e+00 : f32
    %172 = vector.broadcast %cst_62 : f32 to vector<2x384xf32>
    %173 = arith.addf %172, %171 : vector<2x384xf32>
    %174 = arith.divf %172, %173 : vector<2x384xf32>
    %175 = vector.extract_strided_slice %168 {offsets = [0, 384], sizes = [2, 128], strides = [1, 1]} : vector<2x512xf32> to vector<2x128xf32>
    %176 = math.tanh %175 : vector<2x128xf32>
    %177 = vector.extract_strided_slice %174 {offsets = [0, 0], sizes = [2, 128], strides = [1, 1]} : vector<2x384xf32> to vector<2x128xf32>
    %178 = vector.extract_strided_slice %174 {offsets = [0, 128], sizes = [2, 128], strides = [1, 1]} : vector<2x384xf32> to vector<2x128xf32>
    %179 = vector.extract_strided_slice %174 {offsets = [0, 256], sizes = [2, 128], strides = [1, 1]} : vector<2x384xf32> to vector<2x128xf32>
    %180 = arith.mulf %178, %155 : vector<2x128xf32>
    %181 = arith.mulf %177, %176 : vector<2x128xf32>
    %182 = arith.addf %180, %181 : vector<2x128xf32>
    %183 = math.tanh %182 : vector<2x128xf32>
    %184 = arith.mulf %179, %183 : vector<2x128xf32>
    %185 = arith.maximumf %158, %184 : vector<2x128xf32>
    %c3_i32_63 = arith.constant 3 : i32
    %186 = arith.muli %arg0, %c3_i32_63 : i32
    %c1_i32_64 = arith.constant 1 : i32
    %187 = arith.subi %c1_i32_64, %arg0 : i32
    %c4_i32_65 = arith.constant 4 : i32
    %188 = arith.muli %187, %c4_i32_65 : i32
    %189 = arith.addi %186, %188 : i32
    %190 = arith.index_cast %189 : i32 to index
    %c0_66 = arith.constant 0 : index
    %c0_67 = arith.constant 0 : index
    %191 = vector.load %arg7[%190, %c0_66, %c0_67] : memref<8x2x512xf32, #tpu.memory_space<vmem>>, vector<1x2x512xf32>
    %192 = vector.shape_cast %191 : vector<1x2x512xf32> to vector<2x512xf32>
    %193 = arith.truncf %184 : vector<2x128xf32> to vector<2x128xbf16>
    %cst_68 = arith.constant dense<0.000000e+00> : vector<2x512xf32>
    %194 = tpu.matmul %193, %74, %cst_68 {dimension_numbers = #tpu.dot_dimension_numbers<[1], [0], [0], [1], [0, 0, 1, 1], [], []>} : vector<2x128xbf16>, vector<128x512xbf16>, vector<2x512xf32> -> vector<2x512xf32>
    %195 = arith.addf %192, %194 : vector<2x512xf32>
    %196 = vector.extract_strided_slice %195 {offsets = [0, 0], sizes = [2, 384], strides = [1, 1]} : vector<2x512xf32> to vector<2x384xf32>
    %197 = arith.negf %196 : vector<2x384xf32>
    %198 = math.exp %197 : vector<2x384xf32>
    %cst_69 = arith.constant 1.000000e+00 : f32
    %199 = vector.broadcast %cst_69 : f32 to vector<2x384xf32>
    %200 = arith.addf %199, %198 : vector<2x384xf32>
    %201 = arith.divf %199, %200 : vector<2x384xf32>
    %202 = vector.extract_strided_slice %195 {offsets = [0, 384], sizes = [2, 128], strides = [1, 1]} : vector<2x512xf32> to vector<2x128xf32>
    %203 = math.tanh %202 : vector<2x128xf32>
    %204 = vector.extract_strided_slice %201 {offsets = [0, 0], sizes = [2, 128], strides = [1, 1]} : vector<2x384xf32> to vector<2x128xf32>
    %205 = vector.extract_strided_slice %201 {offsets = [0, 128], sizes = [2, 128], strides = [1, 1]} : vector<2x384xf32> to vector<2x128xf32>
    %206 = vector.extract_strided_slice %201 {offsets = [0, 256], sizes = [2, 128], strides = [1, 1]} : vector<2x384xf32> to vector<2x128xf32>
    %207 = arith.mulf %205, %182 : vector<2x128xf32>
    %208 = arith.mulf %204, %203 : vector<2x128xf32>
    %209 = arith.addf %207, %208 : vector<2x128xf32>
    %210 = math.tanh %209 : vector<2x128xf32>
    %211 = arith.mulf %206, %210 : vector<2x128xf32>
    %212 = arith.maximumf %185, %211 : vector<2x128xf32>
    %c2_i32_70 = arith.constant 2 : i32
    %213 = arith.muli %arg0, %c2_i32_70 : i32
    %c1_i32_71 = arith.constant 1 : i32
    %214 = arith.subi %c1_i32_71, %arg0 : i32
    %c5_i32_72 = arith.constant 5 : i32
    %215 = arith.muli %214, %c5_i32_72 : i32
    %216 = arith.addi %213, %215 : i32
    %217 = arith.index_cast %216 : i32 to index
    %c0_73 = arith.constant 0 : index
    %c0_74 = arith.constant 0 : index
    %218 = vector.load %arg7[%217, %c0_73, %c0_74] : memref<8x2x512xf32, #tpu.memory_space<vmem>>, vector<1x2x512xf32>
    %219 = vector.shape_cast %218 : vector<1x2x512xf32> to vector<2x512xf32>
    %220 = arith.truncf %211 : vector<2x128xf32> to vector<2x128xbf16>
    %cst_75 = arith.constant dense<0.000000e+00> : vector<2x512xf32>
    %221 = tpu.matmul %220, %74, %cst_75 {dimension_numbers = #tpu.dot_dimension_numbers<[1], [0], [0], [1], [0, 0, 1, 1], [], []>} : vector<2x128xbf16>, vector<128x512xbf16>, vector<2x512xf32> -> vector<2x512xf32>
    %222 = arith.addf %219, %221 : vector<2x512xf32>
    %223 = vector.extract_strided_slice %222 {offsets = [0, 0], sizes = [2, 384], strides = [1, 1]} : vector<2x512xf32> to vector<2x384xf32>
    %224 = arith.negf %223 : vector<2x384xf32>
    %225 = math.exp %224 : vector<2x384xf32>
    %cst_76 = arith.constant 1.000000e+00 : f32
    %226 = vector.broadcast %cst_76 : f32 to vector<2x384xf32>
    %227 = arith.addf %226, %225 : vector<2x384xf32>
    %228 = arith.divf %226, %227 : vector<2x384xf32>
    %229 = vector.extract_strided_slice %222 {offsets = [0, 384], sizes = [2, 128], strides = [1, 1]} : vector<2x512xf32> to vector<2x128xf32>
    %230 = math.tanh %229 : vector<2x128xf32>
    %231 = vector.extract_strided_slice %228 {offsets = [0, 0], sizes = [2, 128], strides = [1, 1]} : vector<2x384xf32> to vector<2x128xf32>
    %232 = vector.extract_strided_slice %228 {offsets = [0, 128], sizes = [2, 128], strides = [1, 1]} : vector<2x384xf32> to vector<2x128xf32>
    %233 = vector.extract_strided_slice %228 {offsets = [0, 256], sizes = [2, 128], strides = [1, 1]} : vector<2x384xf32> to vector<2x128xf32>
    %234 = arith.mulf %232, %209 : vector<2x128xf32>
    %235 = arith.mulf %231, %230 : vector<2x128xf32>
    %236 = arith.addf %234, %235 : vector<2x128xf32>
    %237 = math.tanh %236 : vector<2x128xf32>
    %238 = arith.mulf %233, %237 : vector<2x128xf32>
    %239 = arith.maximumf %212, %238 : vector<2x128xf32>
    %c1_i32_77 = arith.constant 1 : i32
    %240 = arith.muli %arg0, %c1_i32_77 : i32
    %c1_i32_78 = arith.constant 1 : i32
    %241 = arith.subi %c1_i32_78, %arg0 : i32
    %c6_i32_79 = arith.constant 6 : i32
    %242 = arith.muli %241, %c6_i32_79 : i32
    %243 = arith.addi %240, %242 : i32
    %244 = arith.index_cast %243 : i32 to index
    %c0_80 = arith.constant 0 : index
    %c0_81 = arith.constant 0 : index
    %245 = vector.load %arg7[%244, %c0_80, %c0_81] : memref<8x2x512xf32, #tpu.memory_space<vmem>>, vector<1x2x512xf32>
    %246 = vector.shape_cast %245 : vector<1x2x512xf32> to vector<2x512xf32>
    %247 = arith.truncf %238 : vector<2x128xf32> to vector<2x128xbf16>
    %cst_82 = arith.constant dense<0.000000e+00> : vector<2x512xf32>
    %248 = tpu.matmul %247, %74, %cst_82 {dimension_numbers = #tpu.dot_dimension_numbers<[1], [0], [0], [1], [0, 0, 1, 1], [], []>} : vector<2x128xbf16>, vector<128x512xbf16>, vector<2x512xf32> -> vector<2x512xf32>
    %249 = arith.addf %246, %248 : vector<2x512xf32>
    %250 = vector.extract_strided_slice %249 {offsets = [0, 0], sizes = [2, 384], strides = [1, 1]} : vector<2x512xf32> to vector<2x384xf32>
    %251 = arith.negf %250 : vector<2x384xf32>
    %252 = math.exp %251 : vector<2x384xf32>
    %cst_83 = arith.constant 1.000000e+00 : f32
    %253 = vector.broadcast %cst_83 : f32 to vector<2x384xf32>
    %254 = arith.addf %253, %252 : vector<2x384xf32>
    %255 = arith.divf %253, %254 : vector<2x384xf32>
    %256 = vector.extract_strided_slice %249 {offsets = [0, 384], sizes = [2, 128], strides = [1, 1]} : vector<2x512xf32> to vector<2x128xf32>
    %257 = math.tanh %256 : vector<2x128xf32>
    %258 = vector.extract_strided_slice %255 {offsets = [0, 0], sizes = [2, 128], strides = [1, 1]} : vector<2x384xf32> to vector<2x128xf32>
    %259 = vector.extract_strided_slice %255 {offsets = [0, 128], sizes = [2, 128], strides = [1, 1]} : vector<2x384xf32> to vector<2x128xf32>
    %260 = vector.extract_strided_slice %255 {offsets = [0, 256], sizes = [2, 128], strides = [1, 1]} : vector<2x384xf32> to vector<2x128xf32>
    %261 = arith.mulf %259, %236 : vector<2x128xf32>
    %262 = arith.mulf %258, %257 : vector<2x128xf32>
    %263 = arith.addf %261, %262 : vector<2x128xf32>
    %264 = math.tanh %263 : vector<2x128xf32>
    %265 = arith.mulf %260, %264 : vector<2x128xf32>
    %266 = arith.maximumf %239, %265 : vector<2x128xf32>
    %c0_i32_84 = arith.constant 0 : i32
    %267 = arith.muli %arg0, %c0_i32_84 : i32
    %c1_i32_85 = arith.constant 1 : i32
    %268 = arith.subi %c1_i32_85, %arg0 : i32
    %c7_i32_86 = arith.constant 7 : i32
    %269 = arith.muli %268, %c7_i32_86 : i32
    %270 = arith.addi %267, %269 : i32
    %271 = arith.index_cast %270 : i32 to index
    %c0_87 = arith.constant 0 : index
    %c0_88 = arith.constant 0 : index
    %272 = vector.load %arg7[%271, %c0_87, %c0_88] : memref<8x2x512xf32, #tpu.memory_space<vmem>>, vector<1x2x512xf32>
    %273 = vector.shape_cast %272 : vector<1x2x512xf32> to vector<2x512xf32>
    %274 = arith.truncf %265 : vector<2x128xf32> to vector<2x128xbf16>
    %cst_89 = arith.constant dense<0.000000e+00> : vector<2x512xf32>
    %275 = tpu.matmul %274, %74, %cst_89 {dimension_numbers = #tpu.dot_dimension_numbers<[1], [0], [0], [1], [0, 0, 1, 1], [], []>} : vector<2x128xbf16>, vector<128x512xbf16>, vector<2x512xf32> -> vector<2x512xf32>
    %276 = arith.addf %273, %275 : vector<2x512xf32>
    %277 = vector.extract_strided_slice %276 {offsets = [0, 0], sizes = [2, 384], strides = [1, 1]} : vector<2x512xf32> to vector<2x384xf32>
    %278 = arith.negf %277 : vector<2x384xf32>
    %279 = math.exp %278 : vector<2x384xf32>
    %cst_90 = arith.constant 1.000000e+00 : f32
    %280 = vector.broadcast %cst_90 : f32 to vector<2x384xf32>
    %281 = arith.addf %280, %279 : vector<2x384xf32>
    %282 = arith.divf %280, %281 : vector<2x384xf32>
    %283 = vector.extract_strided_slice %276 {offsets = [0, 384], sizes = [2, 128], strides = [1, 1]} : vector<2x512xf32> to vector<2x128xf32>
    %284 = math.tanh %283 : vector<2x128xf32>
    %285 = vector.extract_strided_slice %282 {offsets = [0, 0], sizes = [2, 128], strides = [1, 1]} : vector<2x384xf32> to vector<2x128xf32>
    %286 = vector.extract_strided_slice %282 {offsets = [0, 128], sizes = [2, 128], strides = [1, 1]} : vector<2x384xf32> to vector<2x128xf32>
    %287 = vector.extract_strided_slice %282 {offsets = [0, 256], sizes = [2, 128], strides = [1, 1]} : vector<2x384xf32> to vector<2x128xf32>
    %288 = arith.mulf %286, %263 : vector<2x128xf32>
    %289 = arith.mulf %285, %284 : vector<2x128xf32>
    %290 = arith.addf %288, %289 : vector<2x128xf32>
    %291 = math.tanh %290 : vector<2x128xf32>
    %292 = arith.mulf %287, %291 : vector<2x128xf32>
    %293 = arith.maximumf %266, %292 : vector<2x128xf32>
    %c0_91 = arith.constant 0 : index
    %c0_92 = arith.constant 0 : index
    %294 = vector.load %arg8[%c0_91, %c0_92] : memref<2x128xf32, #tpu.memory_space<vmem>>, vector<2x128xf32>
    tpu.vector_store %arg8[%c0_91, %c0_92], %292 {strides = array<i32>} : memref<2x128xf32, #tpu.memory_space<vmem>>, vector<2x128xf32>,
    %c0_93 = arith.constant 0 : index
    %c0_94 = arith.constant 0 : index
    %295 = vector.load %arg9[%c0_93, %c0_94] : memref<2x128xf32, #tpu.memory_space<vmem>>, vector<2x128xf32>
    tpu.vector_store %arg9[%c0_93, %c0_94], %290 {strides = array<i32>} : memref<2x128xf32, #tpu.memory_space<vmem>>, vector<2x128xf32>,
    %c0_95 = arith.constant 0 : index
    %c0_96 = arith.constant 0 : index
    %296 = vector.load %arg10[%c0_95, %c0_96] : memref<2x128xf32, #tpu.memory_space<vmem>>, vector<2x128xf32>
    tpu.vector_store %arg10[%c0_95, %c0_96], %293 {strides = array<i32>} : memref<2x128xf32, #tpu.memory_space<vmem>>, vector<2x128xf32>,
    %c0_i32_97 = arith.constant 0 : i32
    %297 = arith.cmpi eq, %arg1, %c0_i32_97 : i32
    %298 = arith.extui %297 : i1 to i32
    %c0_i32_98 = arith.constant 0 : i32
    %299 = arith.cmpi ne, %298, %c0_i32_98 : i32
    scf.if %299 {
      %c0_99 = arith.constant 0 : index
      %c0_100 = arith.constant 0 : index
      %c0_101 = arith.constant 0 : index
      %300 = vector.load %arg6[%c0_99, %c0_100, %c0_101] : memref<1x2x128xf32, #tpu.memory_space<vmem>>, vector<1x2x128xf32>
      %301 = vector.shape_cast %300 : vector<1x2x128xf32> to vector<2x128xf32>
      %302 = vector.shape_cast %293 : vector<2x128xf32> to vector<1x2x128xf32>
      tpu.vector_store %arg6[%c0_99, %c0_100, %c0_101], %302 {strides = array<i32>} : memref<1x2x128xf32, #tpu.memory_space<vmem>>, vector<1x2x128xf32>,
    } else {
    }
    return
  }
  func.func @transform_0(%arg0: i32, %arg1: i32) -> (i32, i32, i32) {
    %c0_i32 = arith.constant 0 : i32
    %0 = arith.subi %c0_i32, %arg1 : i32
    %1 = arith.muli %arg0, %0 : i32
    %c1_i32 = arith.constant 1 : i32
    %2 = arith.subi %c1_i32, %arg0 : i32
    %3 = arith.muli %2, %arg1 : i32
    %4 = arith.addi %1, %3 : i32
    %c0_i32_0 = arith.constant 0 : i32
    %c0_i32_1 = arith.constant 0 : i32
    %c0_i32_2 = arith.constant 0 : i32
    return %c0_i32_0, %4, %c0_i32_1 : i32, i32, i32
  }
  func.func @transform_1(%arg0: i32, %arg1: i32) -> (i32, i32, i32) {
    %c0_i32 = arith.constant 0 : i32
    %c0_i32_0 = arith.constant 0 : i32
    %c0_i32_1 = arith.constant 0 : i32
    return %arg0, %c0_i32, %c0_i32_0 : i32, i32, i32
  }
  func.func @transform_2(%arg0: i32, %arg1: i32) -> (i32, i32, i32) {
    %c0_i32 = arith.constant 0 : i32
    %c0_i32_0 = arith.constant 0 : i32
    %c0_i32_1 = arith.constant 0 : i32
    return %arg0, %c0_i32, %c0_i32_0 : i32, i32, i32
  }
  func.func @transform_3(%arg0: i32, %arg1: i32) -> (i32, i32, i32) {
    %c0_i32 = arith.constant 0 : i32
    %c0_i32_0 = arith.constant 0 : i32
    %c0_i32_1 = arith.constant 0 : i32
    return %arg0, %c0_i32, %c0_i32_0 : i32, i32, i32
  }
  func.func @transform_4(%arg0: i32, %arg1: i32) -> (i32, i32, i32) {
    %c0_i32 = arith.constant 0 : i32
    %c0_i32_0 = arith.constant 0 : i32
    %c0_i32_1 = arith.constant 0 : i32
    return %arg0, %c0_i32, %c0_i32_0 : i32, i32, i32
  }
}

</mosaic_0001>

<bundles_post_ra>
// kernel: lstm_model_forward.1
= control target key start
LH: loop header
LB: loop body
LE: loop exit
PB: predicated region body
PF: predicated region fallthrough
CT: control target
= control target key end

     0   :  { %s3097_s15 = smov 0   ;;  %s3099_s16 = smov 0   ;;  %s4019_s0 = inlined_call_operand.vmem [shape: f32[2,8,64], index: 0, kind: input, shape index: {}]   ;;  %s4020_s1 = inlined_call_operand.vmem [shape: bf16[2,64,512], index: 1, kind: input, shape index: {}]   ;;  %s4021_s2 = inlined_call_operand.vmem [shape: f32[2,1,512], index: 2, kind: input, shape index: {}]   ;;  %s4022_s3 = inlined_call_operand.vmem [shape: bf16[2,128,512], index: 3, kind: input, shape index: {}]   ;;  %s4023_s4 = inlined_call_operand.vmem [shape: f32[2,2,128], index: 4, kind: output, shape index: {}]  }
   0x1   :  { %s3101_s17 = smov 0  }
   0x2 LB: > { %s26_s18 = sadd.s32 1, %s3062_s16  ;;  %p2737_p0 = scmp.ge.s32.totalorder %s3066_s17, 1  ;;  %s3066_s17 = sphi %s3101_s17, %s14_s17   ;;  %s3062_s16 = sphi %s3099_s16, %s4025_s16   ;;  %s3058_s15 = sphi %s3097_s15, %s4024_s15  }
   0x3   : > { %p28_p1 = scmp.ge.s32.totalorder %s26_s18, 2  ;;  %p222_p2 = scmp.lt.s32.totalorder %s3066_s17, 3 }
   0x5   : > { %s4027_s18 = smov (%p28_p1, %s26_s18), 0  ;;  %p223_p3 = pnand %p2737_p0, %p222_p2 }
   0x6   : > { %p279_p4 = scmp.lt.s32.totalorder (!%p223_p3), %s3058_s15, 1  ;;  %v322_v0 = vld [vmem:[%s4019_s0] sm:$0xff] (!%p223_p3)  ;;  %v323_v1 = vld [vmem:[%s4019_s0 + $0x8] sm:$0xff] (!%p223_p3)  ;;  %v3068_v2 = vmov (!%p223_p3), 0   ;;  %vm352_vm0 = vcmask (!%p223_p3), 1041409   ;;  %vm435_vm1 = vcmask (!%p223_p3), 523264  }
   0x7   : > { %226 = sbr.rel (%p223_p3) target bundleno = 2324 (0x914), region = 36  ;;  %471 = vmatprep.mubr.bf16.mxu0 (!%p223_p3), %v3068_v2  ;;  %512 = vmatprep.mubr.bf16.mxu1 (!%p223_p3), %v3068_v2  ;;  %v324_v3 = vpack.c.bf16 (!%p223_p3), %v322_v0, %v322_v0  ;;  %v325_v4 = vpack.c.bf16 (!%p223_p3), %v323_v1, %v323_v1  ;;  %v3069_v39 = vmov (!%p223_p3), 0.0   ;;  %s3667_s13 = ssub.s32 (!%p223_p3), 1, %s3058_s15 }
   0x8   : > { %302 = vst [vmem:[#allocation3] sm:$0x3] (!%p223_p3), %v3069_v39  ;;  %303 = vst [vmem:[#allocation4] sm:$0x3] (!%p223_p3), %v3069_v39  ;;  %s2840_s10 = smul.u32 (!%p223_p3), 56, %s3058_s15  ;;  %s2814_s22 = sshll.u32 (!%p223_p3), %s3667_s13, 1 }
   0x9   : > { %v3135_v5 = vunpack.c.l.b16 (!%p223_p3), %v324_v3  ;;  %v3143_v8 = vunpack.c.l.b16 (!%p223_p3), %v325_v4  ;;  %s1661_s12 = smul.u32 (!%p223_p3), 6, %s3058_s15  ;;  %s2822_s8 = sshll.u32 (!%p223_p3), %s3667_s13, 2 }
   0xa   : > { %s1372_s11 = scalar_lea.vmem (!%p223_p3), [#allocation2], %s2840_s10  ;;  %s1795_s21 = smul.u32 (!%p223_p3), 5, %s3058_s15 }
   0xb   : > { %v882_v9 = vrot.slane (!%p223_p3), %v3135_v5, 4  ;;  %v883_v13 = vrot.slane (!%p223_p3), %v3143_v8, 3  ;;  %v995_v14 = vrot.slane (!%p223_p3), %v3135_v5, 5  ;;  %v996_v17 = vrot.slane (!%p223_p3), %v3143_v8, 4  ;;  %s1663_s14 = sadd.s32 (!%p223_p3), %s3667_s13, %s1661_s12  ;;  %s2063_s7 = smul.u32 (!%p223_p3), 3, %s3058_s15 }
   0xc   : > { %v1108_v20 = vrot.slane (!%p223_p3), %v3135_v5, 6  ;;  %v1109_v21 = vrot.slane (!%p223_p3), %v3143_v8, 5  ;;  %v1221_v24 = vrot.slane (!%p223_p3), %v3135_v5, 7  ;;  %v1222_v25 = vrot.slane (!%p223_p3), %v3143_v8, 6  ;;  %s2841_s19 = sshll.u32 (!%p223_p3), %s1663_s14, 3  ;;  %s2198_s12 = smul.u32 (!%p223_p3), 5, %s3667_s13 }
   0xd   : > { %v3174_v19 = vsel (!%p223_p3), %vm352_vm0, %v883_v13, %v882_v9  ;;  %v3183_v23 = vsel (!%p223_p3), %vm352_vm0, %v996_v17, %v995_v14  ;;  %v351_v31 = vrot.slane (!%p223_p3), %v3143_v8, 7  ;;  %v544_v38 = vrot.slane (!%p223_p3), %v3135_v5, 1  ;;  %s1666_s20 = scalar_lea.vmem (!%p223_p3), [#allocation2], %s2841_s19  ;;  %s2826_s14 = sshll.u32 (!%p223_p3), %s3058_s15, 1 }
   0xe   : > { %s3127_s23 = scalar_select %p279_p4, %s3058_s15, 1  ;;  %v3197_v29 = vsel %vm352_vm0, %v1109_v21, %v1108_v20  ;;  %v3206_v32 = vsel %vm352_vm0, %v1222_v25, %v1221_v24  ;;  %v656_v42 = vrot.slane %v3135_v5, 2  ;;  %v657_v43 = vrot.slane %v3143_v8, 1 }
   0xf   : > { %v353_v36 = vsel %vm352_vm0, %v351_v31, %v3135_v5  ;;  %v545_v40 = vsel %vm352_vm0, %v3143_v8, %v544_v38  ;;  %v769_v46 = vrot.slane %v3135_v5, 3  ;;  %v770_v47 = vrot.slane %v3143_v8, 2  ;;  %s2199_s19 = sadd.s32 %s2826_s14, %s2198_s12 }
  0x10   : > { %s2838_s24 = sshll.u32 %s3127_s23, 7  ;;  %s2839_s28 = sshll.u32 %s3127_s23, 8  ;;  %v354_v37 = vpack.c.b16 %v353_v36, %v353_v36  ;;  %v546_v41 = vpack.c.b16 %v545_v40, %v545_v40  ;;  %v658_v44 = vsel %vm352_vm0, %v657_v43, %v656_v42  ;;  %v885_v50 = vpack.c.b16 %v3174_v19, %v3174_v19 }
  0x11   : > { %s3133_s27 = scalar_lea.vmem %s4020_s1, %s2838_s24  ;;  %s3213_s5 = scalar_lea.vmem %s4022_s3, %s2839_s28  ;;  %v659_v45 = vpack.c.b16 %v658_v44, %v658_v44  ;;  %v771_v48 = vsel %vm352_vm0, %v770_v47, %v769_v46  ;;  %v998_v51 = vpack.c.b16 %v3183_v23, %v3183_v23  ;;  %v1111_v52 = vpack.c.b16 %v3197_v29, %v3197_v29  ;;  %v1366_v23 = vld [vmem:[#allocation3] sm:$0x3] }
  0x12   : > { %v3138_v6 = vld [vmem:[%s3133_s27 + $0x4] ss:$16 sps:$4 sm:$0xff]   ;;  %v3141_v7 = vld [vmem:[%s3133_s27 + $0xc] ss:$16 sps:$4 sm:$0xff]   ;;  %v3149_v10 = vld [vmem:[%s3133_s27] ss:$16 sps:$4 sm:$0xff]   ;;  %v772_v49 = vpack.c.b16 %v771_v48, %v771_v48  ;;  %v1224_v55 = vpack.c.b16 %v3206_v32, %v3206_v32  ;;  %v1374_v24 = vpack.c.bf16 %v1366_v23, %v1366_v23  ;;  %v327_v25 = vlaneseq  ;;  %s1797_s24 = sadd.s32 %s2814_s22, %s1795_s21 }
  0x13   : > { %439 = vmatprep.subr.bf16.mxu0 %v3138_v6  ;;  %v3152_v11 = vld [vmem:[%s3133_s27 + $0x8] ss:$16 sps:$4 sm:$0xff]   ;;  %480 = vmatprep.subr.bf16.mxu1 %v3141_v7  ;;  %v3156_v12 = vld [vmem:[%s3133_s27 + $0x24] ss:$16 sps:$4 sm:$0xff]   ;;  %v3163_v15 = vld [vmem:[%s3133_s27 + $0x2c] ss:$16 sps:$4 sm:$0xff]  }
  0x14   : > { %440 = vmatpush1.bf16.msra.mxu0 %v3149_v10  ;;  %481 = vmatpush1.bf16.msra.mxu1 %v3152_v11  ;;  %v3166_v16 = vld [vmem:[%s3133_s27 + $0x20] ss:$16 sps:$4 sm:$0xff]   ;;  %v3171_v18 = vld [vmem:[%s3133_s27 + $0x28] ss:$16 sps:$4 sm:$0xff]   ;;  %v3180_v22 = vld [vmem:[%s3133_s27 + $0x44] ss:$16 sps:$4 sm:$0xff]  }
  0x15   : > { %441 = vmatprep.subr.bf16.mxu0 %v3156_v12  ;;  %482 = vmatprep.subr.bf16.mxu1 %v3163_v15  ;;  %v3188_v26 = vld [vmem:[%s3133_s27 + $0x4c] ss:$16 sps:$4 sm:$0xff]   ;;  %v3191_v27 = vld [vmem:[%s3133_s27 + $0x40] ss:$16 sps:$4 sm:$0xff]   ;;  %v3194_v28 = vld [vmem:[%s3133_s27 + $0x48] ss:$16 sps:$4 sm:$0xff]  }
  0x16   : > { %v3202_v30 = vld [vmem:[%s3133_s27 + $0x64] ss:$16 sps:$4 sm:$0xff]   ;;  %v3218_v33 = vld [vmem:[%s3133_s27 + $0x6c] ss:$16 sps:$4 sm:$0xff]   ;;  %v3223_v34 = vld [vmem:[%s3133_s27 + $0x60] ss:$16 sps:$4 sm:$0xff]  }
  0x17   : > { %v3226_v35 = vld [vmem:[%s3133_s27 + $0x68] ss:$16 sps:$4 sm:$0xff]   ;;  %v3388_v53 = vld [vmem:[%s3213_s5 + $0x4] ss:$16 sps:$4 sm:$0xff]   ;;  %v3391_v54 = vld [vmem:[%s3213_s5 + $0xc] ss:$16 sps:$4 sm:$0xff]  }
  0x18   : > { %442 = vmatpush1.bf16.msra.mxu0 %v3166_v16  ;;  %483 = vmatpush1.bf16.msra.mxu1 %v3171_v18  ;;  %v3398_v56 = vld [vmem:[%s3213_s5] ss:$16 sps:$4 sm:$0xff]   ;;  %v3401_v57 = vld [vmem:[%s3213_s5 + $0x8] ss:$16 sps:$4 sm:$0xff]   ;;  %v3406_v58 = vld [vmem:[%s3213_s5 + $0x24] ss:$16 sps:$4 sm:$0xff]  }
  0x19   : > { %443 = vmatprep.subr.bf16.mxu0 %v3180_v22  ;;  %484 = vmatprep.subr.bf16.mxu1 %v3188_v26  ;;  %v3409_v59 = vld [vmem:[%s3213_s5 + $0x2c] ss:$16 sps:$4 sm:$0xff]   ;;  %v3416_v60 = vld [vmem:[%s3213_s5 + $0x20] ss:$16 sps:$4 sm:$0xff]   ;;  %v3419_v61 = vld [vmem:[%s3213_s5 + $0x28] ss:$16 sps:$4 sm:$0xff]  }
  0x1a   : > { %v3424_v62 = vld [vmem:[%s3213_s5 + $0x44] ss:$16 sps:$4 sm:$0xff]   ;;  %v3427_v63 = vld [vmem:[%s3213_s5 + $0x4c] ss:$16 sps:$4 sm:$0xff]   ;;  %v3434_v0 = vld [vmem:[%s3213_s5 + $0x40] ss:$16 sps:$4 sm:$0xff]  }
  0x1b   : > { %v3437_v1 = vld [vmem:[%s3213_s5 + $0x48] ss:$16 sps:$4 sm:$0xff]   ;;  %v3442_v3 = vld [vmem:[%s3213_s5 + $0x64] ss:$16 sps:$4 sm:$0xff]   ;;  %v3445_v4 = vld [vmem:[%s3213_s5 + $0x6c] ss:$16 sps:$4 sm:$0xff]  }
  0x1c   : > { %444 = vmatpush1.bf16.msra.mxu0 %v3191_v27  ;;  %485 = vmatpush1.bf16.msra.mxu1 %v3194_v28  ;;  %v3450_v5 = vld [vmem:[%s3213_s5 + $0x60] ss:$16 sps:$4 sm:$0xff]   ;;  %v3461_v8 = vld [vmem:[%s3213_s5 + $0x8c] ss:$16 sps:$4 sm:$0xff]   ;;  %v3485_v14 = vld [vmem:[%s3213_s5 + $0xa8] ss:$16 sps:$4 sm:$0xff]  }
  0x1d   : > { %445 = vmatprep.subr.bf16.mxu0 %v3202_v30  ;;  %486 = vmatprep.subr.bf16.mxu1 %v3218_v33  ;;  %v3466_v9 = vld [vmem:[%s3213_s5 + $0x80] ss:$16 sps:$4 sm:$0xff]   ;;  %v3506_v19 = vld [vmem:[%s3213_s5 + $0xe4] ss:$16 sps:$4 sm:$0xff]   ;;  %v3509_v20 = vld [vmem:[%s3213_s5 + $0xec] ss:$16 sps:$4 sm:$0xff]  }
  0x1e   : > { %v3482_v13 = vld [vmem:[%s3213_s5 + $0xa0] ss:$16 sps:$4 sm:$0xff]   ;;  %s2740_s6 = sshll.u32 %s3127_s23, 2  ;;  %v3070_v31 = vmov 1983009808   ;;  %s2842_s25 = sshll.u32 %s1797_s24, 3 }
  0x1f   : > { %v3498_v17 = vld [vmem:[%s3213_s5 + $0xc0] ss:$16 sps:$4 sm:$0xff]   ;;  %s287_s9 = scalar_lea.vmem %s4021_s2, %s2740_s6  ;;  %v528_v32 = vunpack.c.l.s4 %v3070_v31  ;;  %s1800_s26 = scalar_lea.vmem [#allocation2], %s2842_s25 }
  0x20   : > { %446 = vmatpush1.bf16.msra.mxu0 %v3223_v34  ;;  %487 = vmatpush1.bf16.msra.mxu1 %v3226_v35  ;;  %v3514_v21 = vld [vmem:[%s3213_s5 + $0xe0] ss:$16 sps:$4 sm:$0xff]   ;;  %s1930_s27 = smul.u32 3, %s3667_s13  ;;  %s2818_s28 = sshll.u32 %s3058_s15, 2 }
  0x21   : > { %550 = vmatprep.subr.bf16.mxu0 %v3138_v6  ;;  %591 = vmatprep.subr.bf16.mxu1 %v3141_v7  ;;  %v321_v29 = vld [vmem:[%s287_s9] sm:$0xf]  ;;  %s2065_s9 = sadd.s32 %s2822_s8, %s2063_s7  ;;  %s2331_s21 = smul.u32 6, %s3667_s13 }
  0x22   : > { %s1931_s29 = sadd.s32 %s2818_s28, %s1930_s27  ;;  %s2844_s10 = sshll.u32 %s2065_s9, 3 }
  0x23   : > { %2760 = vmatmul.mubr.msk.bf16.vlgmr.msra.gmra.mrb[0].mxu0 %vm435_vm1, %v354_v37  ;;  %2761 = vmatmul.mubr.msk.bf16.vlgmr.msra.gmra.mrb[0].mxu1 %vm435_vm1, %v354_v37  ;;  %v529_v37 = vunpack.c.0.s8 %v528_v32  ;;  %s2843_s30 = sshll.u32 %s1931_s29, 3  ;;  %s2332_s22 = sadd.s32 %s3058_s15, %s2331_s21 }
  0x24   : > { %551 = vmatpush1.bf16.msra.mxu0 %v3149_v10  ;;  %592 = vmatpush1.bf16.msra.mxu1 %v3152_v11  ;;  %s1934_s6 = scalar_lea.vmem [#allocation2], %s2843_s30  ;;  %s2846_s24 = sshll.u32 %s2332_s22, 3 }
  0x25   : > { %552 = vmatprep.subr.bf16.mxu0 %v3156_v12  ;;  %593 = vmatprep.subr.bf16.mxu1 %v3163_v15  ;;  %s2335_s25 = scalar_lea.vmem [#allocation2], %s2846_s24  ;;  %s2847_s15 = smul.u32 56, %s3667_s13 }
  0x26   : > { %582 = vmatprep.mubr.bf16.mxu0 %v3068_v2  ;;  %623 = vmatprep.mubr.bf16.mxu1 %v3068_v2  ;;  %s2743_s13 = sshll.u32 %s3127_s23, 1 }
  0x27   : > { %s296_s29 = scalar_lea.vmem %s4023_s4, %s2743_s13 }
  0x28   : > { %553 = vmatpush1.bf16.msra.mxu0 %v3166_v16  ;;  %594 = vmatpush1.bf16.msra.mxu1 %v3171_v18 }
  0x29   : > { %554 = vmatprep.subr.bf16.mxu0 %v3180_v22  ;;  %595 = vmatprep.subr.bf16.mxu1 %v3188_v26 }
  0x2c   : > { %555 = vmatpush1.bf16.msra.mxu0 %v3191_v27  ;;  %596 = vmatpush1.bf16.msra.mxu1 %v3194_v28 }
  0x2d   : > { %556 = vmatprep.subr.bf16.mxu0 %v3202_v30  ;;  %597 = vmatprep.subr.bf16.mxu1 %v3218_v33 }
  0x30   : > { %557 = vmatpush1.bf16.msra.mxu0 %v3223_v34  ;;  %598 = vmatpush1.bf16.msra.mxu1 %v3226_v35 }
  0x31   : > { %663 = vmatprep.subr.bf16.mxu0 %v3138_v6  ;;  %704 = vmatprep.subr.bf16.mxu1 %v3141_v7 }
  0x33   : > { %2762 = vmatmul.mubr.msk.bf16.vlgmr.msra.gmra.mrb[4].mxu0 %vm435_vm1, %v546_v41  ;;  %2763 = vmatmul.mubr.msk.bf16.vlgmr.msra.gmra.mrb[4].mxu1 %vm435_vm1, %v546_v41 }
  0x34   : > { %664 = vmatpush1.bf16.msra.mxu0 %v3149_v10  ;;  %705 = vmatpush1.bf16.msra.mxu1 %v3152_v11 }
  0x35   : > { %665 = vmatprep.subr.bf16.mxu0 %v3156_v12  ;;  %706 = vmatprep.subr.bf16.mxu1 %v3163_v15 }
  0x36   : > { %695 = vmatprep.mubr.bf16.mxu0 %v3068_v2  ;;  %736 = vmatprep.mubr.bf16.mxu1 %v3068_v2 }
  0x38   : > { %666 = vmatpush1.bf16.msra.mxu0 %v3166_v16  ;;  %707 = vmatpush1.bf16.msra.mxu1 %v3171_v18 }
  0x39   : > { %667 = vmatprep.subr.bf16.mxu0 %v3180_v22  ;;  %708 = vmatprep.subr.bf16.mxu1 %v3188_v26 }
  0x3c   : > { %668 = vmatpush1.bf16.msra.mxu0 %v3191_v27  ;;  %709 = vmatpush1.bf16.msra.mxu1 %v3194_v28 }
  0x3d   : > { %669 = vmatprep.subr.bf16.mxu0 %v3202_v30  ;;  %710 = vmatprep.subr.bf16.mxu1 %v3218_v33 }
  0x40   : > { %670 = vmatpush1.bf16.msra.mxu0 %v3223_v34  ;;  %711 = vmatpush1.bf16.msra.mxu1 %v3226_v35 }
  0x41   : > { %776 = vmatprep.subr.bf16.mxu0 %v3138_v6  ;;  %817 = vmatprep.subr.bf16.mxu1 %v3141_v7 }
  0x43   : > { %2764 = vmatmul.mubr.msk.bf16.vlgmr.msra.gmra.mrb[8].mxu0 %vm435_vm1, %v659_v45  ;;  %2765 = vmatmul.mubr.msk.bf16.vlgmr.msra.gmra.mrb[8].mxu1 %vm435_vm1, %v659_v45 }
  0x44   : > { %777 = vmatpush1.bf16.msra.mxu0 %v3149_v10  ;;  %818 = vmatpush1.bf16.msra.mxu1 %v3152_v11 }
  0x45   : > { %778 = vmatprep.subr.bf16.mxu0 %v3156_v12  ;;  %819 = vmatprep.subr.bf16.mxu1 %v3163_v15 }
  0x46   : > { %808 = vmatprep.mubr.bf16.mxu0 %v3068_v2  ;;  %849 = vmatprep.mubr.bf16.mxu1 %v3068_v2 }
  0x48   : > { %779 = vmatpush1.bf16.msra.mxu0 %v3166_v16  ;;  %820 = vmatpush1.bf16.msra.mxu1 %v3171_v18 }
  0x49   : > { %780 = vmatprep.subr.bf16.mxu0 %v3180_v22  ;;  %821 = vmatprep.subr.bf16.mxu1 %v3188_v26 }
  0x4c   : > { %781 = vmatpush1.bf16.msra.mxu0 %v3191_v27  ;;  %822 = vmatpush1.bf16.msra.mxu1 %v3194_v28 }
  0x4d   : > { %782 = vmatprep.subr.bf16.mxu0 %v3202_v30  ;;  %823 = vmatprep.subr.bf16.mxu1 %v3218_v33 }
  0x50   : > { %783 = vmatpush1.bf16.msra.mxu0 %v3223_v34  ;;  %824 = vmatpush1.bf16.msra.mxu1 %v3226_v35 }
  0x51   : > { %889 = vmatprep.subr.bf16.mxu0 %v3138_v6  ;;  %930 = vmatprep.subr.bf16.mxu1 %v3141_v7 }
  0x53   : > { %2766 = vmatmul.mubr.msk.bf16.vlgmr.msra.gmra.mrb[12].mxu0 %vm435_vm1, %v772_v49  ;;  %2767 = vmatmul.mubr.msk.bf16.vlgmr.msra.gmra.mrb[12].mxu1 %vm435_vm1, %v772_v49 }
  0x54   : > { %890 = vmatpush1.bf16.msra.mxu0 %v3149_v10  ;;  %931 = vmatpush1.bf16.msra.mxu1 %v3152_v11 }
  0x55   : > { %891 = vmatprep.subr.bf16.mxu0 %v3156_v12  ;;  %932 = vmatprep.subr.bf16.mxu1 %v3163_v15 }
  0x56   : > { %921 = vmatprep.mubr.bf16.mxu0 %v3068_v2  ;;  %962 = vmatprep.mubr.bf16.mxu1 %v3068_v2 }
  0x58   : > { %892 = vmatpush1.bf16.msra.mxu0 %v3166_v16  ;;  %933 = vmatpush1.bf16.msra.mxu1 %v3171_v18 }
  0x59   : > { %893 = vmatprep.subr.bf16.mxu0 %v3180_v22  ;;  %934 = vmatprep.subr.bf16.mxu1 %v3188_v26 }
  0x5c   : > { %894 = vmatpush1.bf16.msra.mxu0 %v3191_v27  ;;  %935 = vmatpush1.bf16.msra.mxu1 %v3194_v28 }
  0x5d   : > { %895 = vmatprep.subr.bf16.mxu0 %v3202_v30  ;;  %936 = vmatprep.subr.bf16.mxu1 %v3218_v33 }
  0x60   : > { %896 = vmatpush1.bf16.msra.mxu0 %v3223_v34  ;;  %937 = vmatpush1.bf16.msra.mxu1 %v3226_v35 }
  0x61   : > { %1002 = vmatprep.subr.bf16.mxu0 %v3138_v6  ;;  %1043 = vmatprep.subr.bf16.mxu1 %v3141_v7 }
  0x63   : > { %2768 = vmatmul.mubr.msk.bf16.vlgmr.msra.gmra.mrb[16].mxu0 %vm435_vm1, %v885_v50  ;;  %2769 = vmatmul.mubr.msk.bf16.vlgmr.msra.gmra.mrb[16].mxu1 %vm435_vm1, %v885_v50 }
  0x64   : > { %1003 = vmatpush1.bf16.msra.mxu0 %v3149_v10  ;;  %1044 = vmatpush1.bf16.msra.mxu1 %v3152_v11 }
  0x65   : > { %1004 = vmatprep.subr.bf16.mxu0 %v3156_v12  ;;  %1045 = vmatprep.subr.bf16.mxu1 %v3163_v15 }
  0x66   : > { %1034 = vmatprep.mubr.bf16.mxu0 %v3068_v2  ;;  %1075 = vmatprep.mubr.bf16.mxu1 %v3068_v2 }
  0x68   : > { %1005 = vmatpush1.bf16.msra.mxu0 %v3166_v16  ;;  %1046 = vmatpush1.bf16.msra.mxu1 %v3171_v18 }
  0x69   : > { %1006 = vmatprep.subr.bf16.mxu0 %v3180_v22  ;;  %1047 = vmatprep.subr.bf16.mxu1 %v3188_v26 }
  0x6c   : > { %1007 = vmatpush1.bf16.msra.mxu0 %v3191_v27  ;;  %1048 = vmatpush1.bf16.msra.mxu1 %v3194_v28 }
  0x6d   : > { %1008 = vmatprep.subr.bf16.mxu0 %v3202_v30  ;;  %1049 = vmatprep.subr.bf16.mxu1 %v3218_v33 }
  0x70   : > { %1009 = vmatpush1.bf16.msra.mxu0 %v3223_v34  ;;  %1050 = vmatpush1.bf16.msra.mxu1 %v3226_v35 }
  0x71   : > { %1115 = vmatprep.subr.bf16.mxu0 %v3138_v6  ;;  %1156 = vmatprep.subr.bf16.mxu1 %v3141_v7 }
  0x73   : > { %2770 = vmatmul.mubr.msk.bf16.vlgmr.msra.gmra.mrb[20].mxu0 %vm435_vm1, %v998_v51  ;;  %2771 = vmatmul.mubr.msk.bf16.vlgmr.msra.gmra.mrb[20].mxu1 %vm435_vm1, %v998_v51 }
  0x74   : > { %1116 = vmatpush1.bf16.msra.mxu0 %v3149_v10  ;;  %1157 = vmatpush1.bf16.msra.mxu1 %v3152_v11 }
  0x75   : > { %1117 = vmatprep.subr.bf16.mxu0 %v3156_v12  ;;  %1158 = vmatprep.subr.bf16.mxu1 %v3163_v15 }
  0x76   : > { %1147 = vmatprep.mubr.bf16.mxu0 %v3068_v2  ;;  %1188 = vmatprep.mubr.bf16.mxu1 %v3068_v2 }
  0x78   : > { %1118 = vmatpush1.bf16.msra.mxu0 %v3166_v16  ;;  %1159 = vmatpush1.bf16.msra.mxu1 %v3171_v18 }
  0x79   : > { %1119 = vmatprep.subr.bf16.mxu0 %v3180_v22  ;;  %1160 = vmatprep.subr.bf16.mxu1 %v3188_v26 }
  0x7c   : > { %1120 = vmatpush1.bf16.msra.mxu0 %v3191_v27  ;;  %1161 = vmatpush1.bf16.msra.mxu1 %v3194_v28 }
  0x7d   : > { %1121 = vmatprep.subr.bf16.mxu0 %v3202_v30  ;;  %1162 = vmatprep.subr.bf16.mxu1 %v3218_v33 }
  0x80   : > { %1122 = vmatpush1.bf16.msra.mxu0 %v3223_v34  ;;  %1163 = vmatpush1.bf16.msra.mxu1 %v3226_v35 }
  0x81   : > { %1228 = vmatprep.subr.bf16.mxu0 %v3138_v6  ;;  %1269 = vmatprep.subr.bf16.mxu1 %v3141_v7  ;;  %v3453_v6 = vld [vmem:[%s3213_s5 + $0x68] ss:$16 sps:$4 sm:$0xff]   ;;  %v3458_v7 = vld [vmem:[%s3213_s5 + $0x84] ss:$16 sps:$4 sm:$0xff]  }
  0x83   : > { %2772 = vmatmul.mubr.msk.bf16.vlgmr.msra.gmra.mrb[24].mxu0 %vm435_vm1, %v1111_v52  ;;  %2773 = vmatmul.mubr.msk.bf16.vlgmr.msra.gmra.mrb[24].mxu1 %vm435_vm1, %v1111_v52 }
  0x84   : > { %1229 = vmatpush1.bf16.msra.mxu0 %v3149_v10  ;;  %1270 = vmatpush1.bf16.msra.mxu1 %v3152_v11  ;;  %v3469_v10 = vld [vmem:[%s3213_s5 + $0x88] ss:$16 sps:$4 sm:$0xff]   ;;  %v3474_v11 = vld [vmem:[%s3213_s5 + $0xa4] ss:$16 sps:$4 sm:$0xff]  }
  0x85   : > { %1230 = vmatprep.subr.bf16.mxu0 %v3156_v12  ;;  %1271 = vmatprep.subr.bf16.mxu1 %v3163_v15  ;;  %v3477_v12 = vld [vmem:[%s3213_s5 + $0xac] ss:$16 sps:$4 sm:$0xff]   ;;  %v3490_v15 = vld [vmem:[%s3213_s5 + $0xc4] ss:$16 sps:$4 sm:$0xff]  }
  0x86   : > { %1260 = vmatprep.mubr.bf16.mxu0 %v3068_v2  ;;  %1301 = vmatprep.mubr.bf16.mxu1 %v3068_v2 }
  0x88   : > { %1231 = vmatpush1.bf16.msra.mxu0 %v3166_v16  ;;  %1272 = vmatpush1.bf16.msra.mxu1 %v3171_v18  ;;  %v3493_v16 = vld [vmem:[%s3213_s5 + $0xcc] ss:$16 sps:$4 sm:$0xff]   ;;  %v3501_v18 = vld [vmem:[%s3213_s5 + $0xc8] ss:$16 sps:$4 sm:$0xff]  }
  0x89   : > { %1232 = vmatprep.subr.bf16.mxu0 %v3180_v22  ;;  %1273 = vmatprep.subr.bf16.mxu1 %v3188_v26  ;;  %v3517_v22 = vld [vmem:[%s3213_s5 + $0xe8] ss:$16 sps:$4 sm:$0xff]   ;;  %v328_v26 = vshrl.u32 %v327_v25, 7 }
  0x8b   : > { %v3574_v46 = vsub.s32 %v529_v37, %v328_v26 }
  0x8c   : > { %1233 = vmatpush1.bf16.msra.mxu0 %v3191_v27  ;;  %1274 = vmatpush1.bf16.msra.mxu1 %v3194_v28  ;;  %v329_v27 = vsub.s32 0, %v328_v26  ;;  %v337_v28 = vsub.s32 2, %v328_v26 }
  0x8d   : > { %1234 = vmatprep.subr.bf16.mxu0 %v3202_v30  ;;  %1275 = vmatprep.subr.bf16.mxu1 %v3218_v33  ;;  %v333_v30 = vsub.s32 1, %v328_v26  ;;  %v341_v33 = vsub.s32 3, %v328_v26 }
  0x8f   : > { %v3567_v36 = vrot.slane %v321_v29, %v333_v30  ;;  %v3569_v38 = vrot.slane %v321_v29, %v341_v33 }
  0x90   : > { %1235 = vmatpush1.bf16.msra.mxu0 %v3223_v34  ;;  %1276 = vmatpush1.bf16.msra.mxu1 %v3226_v35  ;;  %v3563_v34 = vrot.slane %v321_v29, %v329_v27  ;;  %v3565_v35 = vrot.slane %v321_v29, %v337_v28 }
  0x91   : > { %1535 = vmatprep.subr.bf16.mxu0 %v3388_v53  ;;  %1576 = vmatprep.subr.bf16.mxu1 %v3391_v54 }
  0x93   : > { %2774 = vmatmul.mubr.msk.bf16.vlgmr.msra.gmra.mrb[28].mxu0 %vm435_vm1, %v1224_v55  ;;  %2775 = vmatmul.mubr.msk.bf16.vlgmr.msra.gmra.mrb[28].mxu1 %vm435_vm1, %v1224_v55 }
  0x94   : > { %1536 = vmatpush1.bf16.msra.mxu0 %v3398_v56  ;;  %1577 = vmatpush1.bf16.msra.mxu1 %v3401_v57 }
  0x95   : > { %1537 = vmatprep.subr.bf16.mxu0 %v3406_v58  ;;  %1578 = vmatprep.subr.bf16.mxu1 %v3409_v59 }
  0x96   : > { %1567 = vmatprep.mubr.bf16.mxu0 %v3068_v2  ;;  %1608 = vmatprep.mubr.bf16.mxu1 %v3068_v2 }
  0x98   : > { %1538 = vmatpush1.bf16.msra.mxu0 %v3416_v60  ;;  %1579 = vmatpush1.bf16.msra.mxu1 %v3419_v61 }
  0x99   : > { %1539 = vmatprep.subr.bf16.mxu0 %v3424_v62  ;;  %1580 = vmatprep.subr.bf16.mxu1 %v3427_v63 }
  0x9c   : > { %1540 = vmatpush1.bf16.msra.mxu0 %v3434_v0  ;;  %1581 = vmatpush1.bf16.msra.mxu1 %v3437_v1 }
  0x9d   : > { %1541 = vmatprep.subr.bf16.mxu0 %v3442_v3  ;;  %1582 = vmatprep.subr.bf16.mxu1 %v3445_v4 }
  0xa0   : > { %1542 = vmatpush1.bf16.msra.mxu0 %v3450_v5  ;;  %1583 = vmatpush1.bf16.msra.mxu1 %v3453_v6 }
  0xa1   : > { %1543 = vmatprep.subr.bf16.mxu0 %v3458_v7  ;;  %1584 = vmatprep.subr.bf16.mxu1 %v3461_v8 }
  0xa4   : > { %1544 = vmatpush1.bf16.msra.mxu0 %v3466_v9  ;;  %1585 = vmatpush1.bf16.msra.mxu1 %v3469_v10 }
  0xa5   : > { %1545 = vmatprep.subr.bf16.mxu0 %v3474_v11  ;;  %1586 = vmatprep.subr.bf16.mxu1 %v3477_v12 }
  0xa8   : > { %1546 = vmatpush1.bf16.msra.mxu0 %v3482_v13  ;;  %1587 = vmatpush1.bf16.msra.mxu1 %v3485_v14 }
  0xa9   : > { %1547 = vmatprep.subr.bf16.mxu0 %v3490_v15  ;;  %1588 = vmatprep.subr.bf16.mxu1 %v3493_v16 }
  0xac   : > { %1548 = vmatpush1.bf16.msra.mxu0 %v3498_v17  ;;  %1589 = vmatpush1.bf16.msra.mxu1 %v3501_v18 }
  0xad   : > { %1549 = vmatprep.subr.bf16.mxu0 %v3506_v19  ;;  %1590 = vmatprep.subr.bf16.mxu1 %v3509_v20 }
  0xb0   : > { %1550 = vmatpush1.bf16.msra.mxu0 %v3514_v21  ;;  %1591 = vmatpush1.bf16.msra.mxu1 %v3517_v22 }
  0xb1   : > { %1669 = vmatprep.subr.bf16.mxu0 %v3388_v53  ;;  %1710 = vmatprep.subr.bf16.mxu1 %v3391_v54 }
  0xb3   : > { %1568 = vmatmul.mubr.bf16.vlgmr.msra.gmra.mrb[32].mxu0 %v1374_v24  ;;  %1609 = vmatmul.mubr.bf16.vlgmr.msra.gmra.mrb[32].mxu1 %v1374_v24 }
  0xb4   : > { %1670 = vmatpush1.bf16.msra.mxu0 %v3398_v56  ;;  %1711 = vmatpush1.bf16.msra.mxu1 %v3401_v57 }
  0xb5   : > { %1671 = vmatprep.subr.bf16.mxu0 %v3406_v58  ;;  %1712 = vmatprep.subr.bf16.mxu1 %v3409_v59 }
  0xb6   : > { %1701 = vmatprep.mubr.bf16.mxu0 %v3068_v2  ;;  %1742 = vmatprep.mubr.bf16.mxu1 %v3068_v2 }
  0xb8   : > { %1672 = vmatpush1.bf16.msra.mxu0 %v3416_v60  ;;  %1713 = vmatpush1.bf16.msra.mxu1 %v3419_v61 }
  0xb9   : > { %1673 = vmatprep.subr.bf16.mxu0 %v3424_v62  ;;  %1714 = vmatprep.subr.bf16.mxu1 %v3427_v63 }
  0xbc   : > { %1674 = vmatpush1.bf16.msra.mxu0 %v3434_v0  ;;  %1715 = vmatpush1.bf16.msra.mxu1 %v3437_v1 }
  0xbd   : > { %1675 = vmatprep.subr.bf16.mxu0 %v3442_v3  ;;  %1716 = vmatprep.subr.bf16.mxu1 %v3445_v4 }
  0xc0   : > { %1676 = vmatpush1.bf16.msra.mxu0 %v3450_v5  ;;  %1717 = vmatpush1.bf16.msra.mxu1 %v3453_v6 }
  0xc1   : > { %1677 = vmatprep.subr.bf16.mxu0 %v3458_v7  ;;  %1718 = vmatprep.subr.bf16.mxu1 %v3461_v8 }
  0xc4   : > { %1678 = vmatpush1.bf16.msra.mxu0 %v3466_v9  ;;  %1719 = vmatpush1.bf16.msra.mxu1 %v3469_v10 }
  0xc5   : > { %1679 = vmatprep.subr.bf16.mxu0 %v3474_v11  ;;  %1720 = vmatprep.subr.bf16.mxu1 %v3477_v12 }
  0xc8   : > { %1680 = vmatpush1.bf16.msra.mxu0 %v3482_v13  ;;  %1721 = vmatpush1.bf16.msra.mxu1 %v3485_v14 }
  0xc9   : > { %1681 = vmatprep.subr.bf16.mxu0 %v3490_v15  ;;  %1722 = vmatprep.subr.bf16.mxu1 %v3493_v16 }
  0xcc   : > { %1682 = vmatpush1.bf16.msra.mxu0 %v3498_v17  ;;  %1723 = vmatpush1.bf16.msra.mxu1 %v3501_v18 }
  0xcd   : > { %1683 = vmatprep.subr.bf16.mxu0 %v3506_v19  ;;  %1724 = vmatprep.subr.bf16.mxu1 %v3509_v20 }
  0xd0   : > { %1684 = vmatpush1.bf16.msra.mxu0 %v3514_v21  ;;  %1725 = vmatpush1.bf16.msra.mxu1 %v3517_v22 }
  0xd1   : > { %1803 = vmatprep.subr.bf16.mxu0 %v3388_v53  ;;  %1844 = vmatprep.subr.bf16.mxu1 %v3391_v54 }
  0xf6   : > { %v473_v39 = vpop.f32.mrb[0].mxu0  ;;  %v514_v40 = vpop.f32.mrb[0].mxu1 }
  0xf7   : > { %v474_v41 = vadd.f32 %v473_v39, %v3563_v34  ;;  %v515_v42 = vadd.f32 %v514_v40, %v3565_v35  ;;  %v475_v43 = vpop.f32.mrb[1].mxu0  ;;  %v516_v44 = vpop.f32.mrb[1].mxu1 }
  0xf8   : > { %v476_v45 = vadd.f32 %v475_v43, %v3567_v36  ;;  %v517_v47 = vadd.f32 %v516_v44, %v3569_v38  ;;  %v477_v48 = vpop.f32.mrb[2].mxu0  ;;  %v518_v49 = vpop.f32.mrb[2].mxu1 }
  0xf9   : > { %v478_v50 = vpop.f32.mrb[3].mxu0  ;;  %v519_v51 = vpop.f32.mrb[3].mxu1 }
  0xfa   : > { %v525_v52 = vcombine.low %v474_v41, %v476_v45  ;;  %v526_v55 = vcombine.low %v515_v42, %v517_v47 }
  0xfc   : > { %v533_v23 = vrot.slane %v525_v52, %v3574_v46  ;;  %v540_v24 = vrot.slane %v526_v55, %v3574_v46 }
  0xfe   : > { %v541_v25 = vcombine.low %v533_v23, %v540_v24 }
 0x100   : > { %543 = vst [vmem:[#allocation2] sm:$0xff] %v541_v25 }
 0x106   : > { %v584_v27 = vpop.f32.mrb[4].mxu0  ;;  %v625_v28 = vpop.f32.mrb[4].mxu1 }
 0x107   : > { %v585_v29 = vadd.f32 %v584_v27, %v3563_v34  ;;  %v626_v26 = vadd.f32 %v625_v28, %v3565_v35  ;;  %v586_v30 = vpop.f32.mrb[5].mxu0  ;;  %v627_v31 = vpop.f32.mrb[5].mxu1 }
 0x108   : > { %v587_v32 = vadd.f32 %v586_v30, %v3567_v36  ;;  %v628_v33 = vadd.f32 %v627_v31, %v3569_v38  ;;  %v588_v37 = vpop.f32.mrb[6].mxu0  ;;  %v629_v39 = vpop.f32.mrb[6].mxu1 }
 0x109   : > { %v589_v40 = vpop.f32.mrb[7].mxu0  ;;  %v630_v41 = vpop.f32.mrb[7].mxu1 }
 0x10a   : > { %v636_v42 = vcombine.low %v585_v29, %v587_v32  ;;  %v637_v43 = vcombine.low %v626_v26, %v628_v33 }
 0x10c   : > { %v644_v44 = vrot.slane %v636_v42, %v3574_v46  ;;  %v651_v45 = vrot.slane %v637_v43, %v3574_v46 }
 0x10e   : > { %v652_v47 = vcombine.low %v644_v44, %v651_v45 }
 0x110   : > { %655 = vst [vmem:[#allocation2 + $0x8] sm:$0xff] %v652_v47 }
 0x116   : > { %v697_v48 = vpop.f32.mrb[8].mxu0  ;;  %v738_v49 = vpop.f32.mrb[8].mxu1 }
 0x117   : > { %v698_v50 = vadd.f32 %v697_v48, %v3563_v34  ;;  %v739_v51 = vadd.f32 %v738_v49, %v3565_v35  ;;  %v699_v52 = vpop.f32.mrb[9].mxu0  ;;  %v740_v55 = vpop.f32.mrb[9].mxu1 }
 0x118   : > { %v700_v23 = vadd.f32 %v699_v52, %v3567_v36  ;;  %v741_v24 = vadd.f32 %v740_v55, %v3569_v38  ;;  %v701_v25 = vpop.f32.mrb[10].mxu0  ;;  %v742_v27 = vpop.f32.mrb[10].mxu1 }
 0x119   : > { %v702_v28 = vpop.f32.mrb[11].mxu0  ;;  %v743_v29 = vpop.f32.mrb[11].mxu1  ;;  %v3071_v25 = vmov -inf  }
 0x11a   : > { %v749_v26 = vcombine.low %v698_v50, %v700_v23  ;;  %v750_v30 = vcombine.low %v739_v51, %v741_v24  ;;  %304 = vst [vmem:[#allocation5] sm:$0x3] %v3071_v25 }
 0x11c   : > { %v757_v31 = vrot.slane %v749_v26, %v3574_v46  ;;  %v764_v32 = vrot.slane %v750_v30, %v3574_v46 }
 0x11e   : > { %v765_v33 = vcombine.low %v757_v31, %v764_v32 }
 0x120   : > { %768 = vst [vmem:[#allocation2 + $0x10] sm:$0xff] %v765_v33 }
 0x126   : > { %v810_v37 = vpop.f32.mrb[12].mxu0  ;;  %v851_v39 = vpop.f32.mrb[12].mxu1 }
 0x127   : > { %v811_v40 = vadd.f32 %v810_v37, %v3563_v34  ;;  %v852_v41 = vadd.f32 %v851_v39, %v3565_v35  ;;  %v812_v42 = vpop.f32.mrb[13].mxu0  ;;  %v853_v43 = vpop.f32.mrb[13].mxu1 }
 0x128   : > { %v813_v44 = vadd.f32 %v812_v42, %v3567_v36  ;;  %v854_v45 = vadd.f32 %v853_v43, %v3569_v38  ;;  %v814_v47 = vpop.f32.mrb[14].mxu0  ;;  %v855_v48 = vpop.f32.mrb[14].mxu1 }
 0x129   : > { %v815_v49 = vpop.f32.mrb[15].mxu0  ;;  %v856_v50 = vpop.f32.mrb[15].mxu1 }
 0x12a   : > { %v862_v51 = vcombine.low %v811_v40, %v813_v44  ;;  %v863_v52 = vcombine.low %v852_v41, %v854_v45 }
 0x12c   : > { %v870_v55 = vrot.slane %v862_v51, %v3574_v46  ;;  %v877_v23 = vrot.slane %v863_v52, %v3574_v46 }
 0x12e   : > { %v878_v24 = vcombine.low %v870_v55, %v877_v23 }
 0x130   : > { %881 = vst [vmem:[#allocation2 + $0x18] sm:$0xff] %v878_v24 }
 0x136   : > { %v923_v27 = vpop.f32.mrb[16].mxu0  ;;  %v964_v28 = vpop.f32.mrb[16].mxu1 }
 0x137   : > { %v924_v29 = vadd.f32 %v923_v27, %v3563_v34  ;;  %v965_v26 = vadd.f32 %v964_v28, %v3565_v35  ;;  %v925_v30 = vpop.f32.mrb[17].mxu0  ;;  %v966_v31 = vpop.f32.mrb[17].mxu1 }
 0x138   : > { %v926_v32 = vadd.f32 %v925_v30, %v3567_v36  ;;  %v967_v33 = vadd.f32 %v966_v31, %v3569_v38  ;;  %v927_v37 = vpop.f32.mrb[18].mxu0  ;;  %v968_v39 = vpop.f32.mrb[18].mxu1 }
 0x139   : > { %v928_v40 = vpop.f32.mrb[19].mxu0  ;;  %v969_v41 = vpop.f32.mrb[19].mxu1 }
 0x13a   : > { %v975_v42 = vcombine.low %v924_v29, %v926_v32  ;;  %v976_v43 = vcombine.low %v965_v26, %v967_v33 }
 0x13c   : > { %v983_v44 = vrot.slane %v975_v42, %v3574_v46  ;;  %v990_v45 = vrot.slane %v976_v43, %v3574_v46 }
 0x13e   : > { %v991_v47 = vcombine.low %v983_v44, %v990_v45 }
 0x140   : > { %994 = vst [vmem:[#allocation2 + $0x20] sm:$0xff] %v991_v47 }
 0x146   : > { %v1036_v48 = vpop.f32.mrb[20].mxu0  ;;  %v1077_v49 = vpop.f32.mrb[20].mxu1 }
 0x147   : > { %v1037_v50 = vadd.f32 %v1036_v48, %v3563_v34  ;;  %v1078_v51 = vadd.f32 %v1077_v49, %v3565_v35  ;;  %v1038_v52 = vpop.f32.mrb[21].mxu0  ;;  %v1079_v55 = vpop.f32.mrb[21].mxu1 }
 0x148   : > { %v1039_v23 = vadd.f32 %v1038_v52, %v3567_v36  ;;  %v1080_v24 = vadd.f32 %v1079_v55, %v3569_v38  ;;  %v1040_v25 = vpop.f32.mrb[22].mxu0  ;;  %v1081_v27 = vpop.f32.mrb[22].mxu1 }
 0x149   : > { %v1041_v28 = vpop.f32.mrb[23].mxu0  ;;  %v1082_v29 = vpop.f32.mrb[23].mxu1 }
 0x14a   : > { %v1088_v26 = vcombine.low %v1037_v50, %v1039_v23  ;;  %v1089_v30 = vcombine.low %v1078_v51, %v1080_v24 }
 0x14c   : > { %v1096_v31 = vrot.slane %v1088_v26, %v3574_v46  ;;  %v1103_v32 = vrot.slane %v1089_v30, %v3574_v46 }
 0x14e   : > { %v1104_v33 = vcombine.low %v1096_v31, %v1103_v32 }
 0x150   : > { %1107 = vst [vmem:[#allocation2 + $0x28] sm:$0xff] %v1104_v33 }
 0x156   : > { %v1149_v37 = vpop.f32.mrb[24].mxu0  ;;  %v1190_v39 = vpop.f32.mrb[24].mxu1 }
 0x157   : > { %v1150_v40 = vadd.f32 %v1149_v37, %v3563_v34  ;;  %v1191_v41 = vadd.f32 %v1190_v39, %v3565_v35  ;;  %v1151_v42 = vpop.f32.mrb[25].mxu0  ;;  %v1192_v43 = vpop.f32.mrb[25].mxu1 }
 0x158   : > { %v1152_v44 = vadd.f32 %v1151_v42, %v3567_v36  ;;  %v1193_v45 = vadd.f32 %v1192_v43, %v3569_v38  ;;  %v1153_v47 = vpop.f32.mrb[26].mxu0  ;;  %v1194_v48 = vpop.f32.mrb[26].mxu1 }
 0x159   : > { %v1154_v49 = vpop.f32.mrb[27].mxu0  ;;  %v1195_v50 = vpop.f32.mrb[27].mxu1 }
 0x15a   : > { %v1201_v51 = vcombine.low %v1150_v40, %v1152_v44  ;;  %v1202_v52 = vcombine.low %v1191_v41, %v1193_v45 }
 0x15c   : > { %v1209_v55 = vrot.slane %v1201_v51, %v3574_v46  ;;  %v1216_v23 = vrot.slane %v1202_v52, %v3574_v46 }
 0x15e   : > { %v1217_v24 = vcombine.low %v1209_v55, %v1216_v23 }
 0x160   : > { %1220 = vst [vmem:[#allocation2 + $0x30] sm:$0xff] %v1217_v24 }
 0x166   : > { %v1262_v25 = vpop.f32.mrb[28].mxu0  ;;  %v1303_v27 = vpop.f32.mrb[28].mxu1 }
 0x167   : > { %v1263_v28 = vadd.f32 %v1262_v25, %v3563_v34  ;;  %v1304_v29 = vadd.f32 %v1303_v27, %v3565_v35  ;;  %v1264_v26 = vpop.f32.mrb[29].mxu0  ;;  %v1305_v30 = vpop.f32.mrb[29].mxu1 }
 0x168   : > { %v1265_v31 = vadd.f32 %v1264_v26, %v3567_v36  ;;  %v1306_v32 = vadd.f32 %v1305_v30, %v3569_v38  ;;  %v1266_v33 = vpop.f32.mrb[30].mxu0  ;;  %v1307_v37 = vpop.f32.mrb[30].mxu1 }
 0x169   : > { %v1267_v39 = vpop.f32.mrb[31].mxu0  ;;  %v1308_v40 = vpop.f32.mrb[31].mxu1 }
 0x16a   : > { %v1314_v41 = vcombine.low %v1263_v28, %v1265_v31  ;;  %v1315_v42 = vcombine.low %v1304_v29, %v1306_v32  ;;  %v1367_v32 = vld [vmem:[#allocation4] sm:$0x3] }
 0x16c   : > { %v1322_v43 = vrot.slane %v1314_v41, %v3574_v46  ;;  %v1329_v44 = vrot.slane %v1315_v42, %v3574_v46 }
 0x16e   : > { %v1330_v34 = vcombine.low %v1322_v43, %v1329_v44 }
 0x170   : > { %1333 = vst [vmem:[#allocation2 + $0x38] sm:$0xff] %v1330_v34 }
 0x177   : > { %v1373_v25 = vld [vmem:[%s1372_s11] sm:$0xff]  ;;  %s2068_s11 = scalar_lea.vmem [#allocation2], %s2844_s10 }
 0x186   : > { %v1569_v35 = vpop.f32.mrb[32].mxu0  ;;  %v1610_v45 = vpop.f32.mrb[32].mxu1 }
 0x187   : > { %v1571_v47 = vpop.f32.mrb[33].mxu0  ;;  %v1612_v48 = vpop.f32.mrb[33].mxu1 }
 0x188   : > { %v1621_v36 = vcombine.low %v1569_v35, %v1571_v47  ;;  %v1622_v49 = vcombine.low %v1610_v45, %v1612_v48  ;;  %v1573_v38 = vpop.f32.mrb[34].mxu0  ;;  %v1614_v50 = vpop.f32.mrb[34].mxu1 }
 0x189   : > { %v1574_v51 = vpop.f32.mrb[35].mxu0  ;;  %v1615_v52 = vpop.f32.mrb[35].mxu1 }
 0x18a   : > { %v1629_v55 = vrot.slane %v1621_v36, %v3574_v46  ;;  %v1636_v23 = vrot.slane %v1622_v49, %v3574_v46 }
 0x18c   : > { %v1637_v24 = vcombine.low %v1629_v55, %v1636_v23 }
 0x18e   : > { %v1639_v27 = vadd.f32 %v1637_v24, %v1373_v25  ;;  %v1667_v25 = vld [vmem:[%s1666_s20] sm:$0xff]  ;;  %s2845_s20 = sshll.u32 %s2199_s19, 3 }
 0x190   : > { %v2810_v28 = vmul.f32 -1.442695, %v1639_v27  ;;  %v1647_v30 = vrot.slane %v1639_v27, 6 }
 0x192   : > { %2948 = vpow2.f32 %v2810_v28 }
 0x19c   : > { %v2949_v29 = vpop.eup %2948 }
 0x19d   : > { %v1643_v26 = vadd.f32 1.0, %v2949_v29 }
 0x19f   : > { %2950 = vrcp.f32 %v1643_v26 }
 0x1a0   : > { %2952 = vtanh.f32 %v1647_v30 }
 0x1a9   : > { %v2951_v31 = vpop.eup %2950 }
 0x1aa   : > { %v1651_v33 = vrot.slane %v2951_v31, 2  ;;  %v2953_v37 = vpop.eup %2952  ;;  %v1657_v42 = vrot.slane %v2951_v31, 4 }
 0x1ab   : > { %v1654_v40 = vmul.f32 %v2953_v37, %v2951_v31 }
 0x1ac   : > { %v1653_v39 = vmul.f32 %v1651_v33, %v1367_v32 }
 0x1ae   : > { %v3624_v41 = vadd.f32 %v1654_v40, %v1653_v39 }
 0x1b0   : > { %2954 = vtanh.f32 %v3624_v41 }
 0x1ba   : > { %v2955_v43 = vpop.eup %2954 }
 0x1bb   : > { %v3627_v44 = vmul.f32 %v2955_v43, %v1657_v42  ;;  %v1368_v42 = vld [vmem:[#allocation5] sm:$0x3] }
 0x1bd   : > { %v1668_v34 = vpack.c.bf16 %v3627_v44, %v3627_v44 }
 0x1bf   : > { %1702 = vmatmul.mubr.bf16.vlgmr.msra.gmra.mrb[36].mxu0 %v1668_v34  ;;  %1743 = vmatmul.mubr.bf16.vlgmr.msra.gmra.mrb[36].mxu1 %v1668_v34 }
 0x1c0   : > { %1804 = vmatpush1.bf16.msra.mxu0 %v3398_v56  ;;  %1845 = vmatpush1.bf16.msra.mxu1 %v3401_v57 }
 0x1c1   : > { %1805 = vmatprep.subr.bf16.mxu0 %v3406_v58  ;;  %1846 = vmatprep.subr.bf16.mxu1 %v3409_v59 }
 0x1c2   : > { %1835 = vmatprep.mubr.bf16.mxu0 %v3068_v2  ;;  %1876 = vmatprep.mubr.bf16.mxu1 %v3068_v2 }
 0x1c4   : > { %1806 = vmatpush1.bf16.msra.mxu0 %v3416_v60  ;;  %1847 = vmatpush1.bf16.msra.mxu1 %v3419_v61 }
 0x1c5   : > { %1807 = vmatprep.subr.bf16.mxu0 %v3424_v62  ;;  %1848 = vmatprep.subr.bf16.mxu1 %v3427_v63 }
 0x1c8   : > { %1808 = vmatpush1.bf16.msra.mxu0 %v3434_v0  ;;  %1849 = vmatpush1.bf16.msra.mxu1 %v3437_v1 }
 0x1c9   : > { %1809 = vmatprep.subr.bf16.mxu0 %v3442_v3  ;;  %1850 = vmatprep.subr.bf16.mxu1 %v3445_v4 }
 0x1cc   : > { %1810 = vmatpush1.bf16.msra.mxu0 %v3450_v5  ;;  %1851 = vmatpush1.bf16.msra.mxu1 %v3453_v6 }
 0x1cd   : > { %1811 = vmatprep.subr.bf16.mxu0 %v3458_v7  ;;  %1852 = vmatprep.subr.bf16.mxu1 %v3461_v8 }
 0x1d0   : > { %1812 = vmatpush1.bf16.msra.mxu0 %v3466_v9  ;;  %1853 = vmatpush1.bf16.msra.mxu1 %v3469_v10 }
 0x1d1   : > { %1813 = vmatprep.subr.bf16.mxu0 %v3474_v11  ;;  %1854 = vmatprep.subr.bf16.mxu1 %v3477_v12 }
 0x1d4   : > { %1814 = vmatpush1.bf16.msra.mxu0 %v3482_v13  ;;  %1855 = vmatpush1.bf16.msra.mxu1 %v3485_v14 }
 0x1d5   : > { %1815 = vmatprep.subr.bf16.mxu0 %v3490_v15  ;;  %1856 = vmatprep.subr.bf16.mxu1 %v3493_v16 }
 0x1d8   : > { %1816 = vmatpush1.bf16.msra.mxu0 %v3498_v17  ;;  %1857 = vmatpush1.bf16.msra.mxu1 %v3501_v18 }
 0x1d9   : > { %1817 = vmatprep.subr.bf16.mxu0 %v3506_v19  ;;  %1858 = vmatprep.subr.bf16.mxu1 %v3509_v20 }
 0x1dc   : > { %1818 = vmatpush1.bf16.msra.mxu0 %v3514_v21  ;;  %1859 = vmatpush1.bf16.msra.mxu1 %v3517_v22 }
 0x1dd   : > { %1937 = vmatprep.subr.bf16.mxu0 %v3388_v53  ;;  %1978 = vmatprep.subr.bf16.mxu1 %v3391_v54 }
 0x292   : > { %v1703_v35 = vpop.f32.mrb[36].mxu0  ;;  %v1744_v45 = vpop.f32.mrb[36].mxu1 }
 0x293   : > { %v1705_v47 = vpop.f32.mrb[37].mxu0  ;;  %v1746_v48 = vpop.f32.mrb[37].mxu1 }
 0x294   : > { %v1755_v36 = vcombine.low %v1703_v35, %v1705_v47  ;;  %v1756_v49 = vcombine.low %v1744_v45, %v1746_v48  ;;  %v1707_v38 = vpop.f32.mrb[38].mxu0  ;;  %v1748_v50 = vpop.f32.mrb[38].mxu1  ;;  %v1660_v35 = vmax.f32 %v1368_v42, %v3627_v44 }
 0x295   : > { %v1708_v51 = vpop.f32.mrb[39].mxu0  ;;  %v1749_v52 = vpop.f32.mrb[39].mxu1 }
 0x296   : > { %v1763_v55 = vrot.slane %v1755_v36, %v3574_v46  ;;  %v1770_v23 = vrot.slane %v1756_v49, %v3574_v46 }
 0x298   : > { %v1771_v24 = vcombine.low %v1763_v55, %v1770_v23 }
 0x29a   : > { %v1773_v27 = vadd.f32 %v1771_v24, %v1667_v25 }
 0x29c   : > { %v2813_v28 = vmul.f32 -1.442695, %v1773_v27  ;;  %v1781_v30 = vrot.slane %v1773_v27, 6 }
 0x29e   : > { %2956 = vpow2.f32 %v2813_v28  ;;  %v1801_v28 = vld [vmem:[%s1800_s26] sm:$0xff]  ;;  %s2467_s26 = scalar_lea.vmem [#allocation2], %s2847_s15 }
 0x2a8   : > { %v2957_v29 = vpop.eup %2956 }
 0x2a9   : > { %v1777_v26 = vadd.f32 1.0, %v2957_v29 }
 0x2ab   : > { %2958 = vrcp.f32 %v1777_v26 }
 0x2ac   : > { %2960 = vtanh.f32 %v1781_v30 }
 0x2b5   : > { %v2959_v31 = vpop.eup %2958 }
 0x2b6   : > { %v1785_v32 = vrot.slane %v2959_v31, 2  ;;  %v2961_v33 = vpop.eup %2960  ;;  %v1791_v43 = vrot.slane %v2959_v31, 4 }
 0x2b7   : > { %v1788_v39 = vmul.f32 %v2961_v33, %v2959_v31 }
 0x2b8   : > { %v1787_v37 = vmul.f32 %v1785_v32, %v3624_v41 }
 0x2ba   : > { %v3673_v40 = vadd.f32 %v1788_v39, %v1787_v37 }
 0x2bc   : > { %2962 = vtanh.f32 %v3673_v40 }
 0x2c6   : > { %v2963_v34 = vpop.eup %2962 }
 0x2c7   : > { %v1793_v45 = vmul.f32 %v2963_v34, %v1791_v43 }
 0x2c9   : > { %v3677_v47 = vmax.f32 %v1660_v35, %v1793_v45  ;;  %v1802_v48 = vpack.c.bf16 %v1793_v45, %v1793_v45 }
 0x2cb   : > { %1836 = vmatmul.mubr.bf16.vlgmr.msra.gmra.mrb[40].mxu0 %v1802_v48  ;;  %1877 = vmatmul.mubr.bf16.vlgmr.msra.gmra.mrb[40].mxu1 %v1802_v48 }
 0x2cc   : > { %1938 = vmatpush1.bf16.msra.mxu0 %v3398_v56  ;;  %1979 = vmatpush1.bf16.msra.mxu1 %v3401_v57 }
 0x2cd   : > { %1939 = vmatprep.subr.bf16.mxu0 %v3406_v58  ;;  %1980 = vmatprep.subr.bf16.mxu1 %v3409_v59 }
 0x2ce   : > { %1969 = vmatprep.mubr.bf16.mxu0 %v3068_v2  ;;  %2010 = vmatprep.mubr.bf16.mxu1 %v3068_v2 }
 0x2d0   : > { %1940 = vmatpush1.bf16.msra.mxu0 %v3416_v60  ;;  %1981 = vmatpush1.bf16.msra.mxu1 %v3419_v61 }
 0x2d1   : > { %1941 = vmatprep.subr.bf16.mxu0 %v3424_v62  ;;  %1982 = vmatprep.subr.bf16.mxu1 %v3427_v63 }
 0x2d4   : > { %1942 = vmatpush1.bf16.msra.mxu0 %v3434_v0  ;;  %1983 = vmatpush1.bf16.msra.mxu1 %v3437_v1 }
 0x2d5   : > { %1943 = vmatprep.subr.bf16.mxu0 %v3442_v3  ;;  %1984 = vmatprep.subr.bf16.mxu1 %v3445_v4 }
 0x2d8   : > { %1944 = vmatpush1.bf16.msra.mxu0 %v3450_v5  ;;  %1985 = vmatpush1.bf16.msra.mxu1 %v3453_v6 }
 0x2d9   : > { %1945 = vmatprep.subr.bf16.mxu0 %v3458_v7  ;;  %1986 = vmatprep.subr.bf16.mxu1 %v3461_v8 }
 0x2dc   : > { %1946 = vmatpush1.bf16.msra.mxu0 %v3466_v9  ;;  %1987 = vmatpush1.bf16.msra.mxu1 %v3469_v10 }
 0x2dd   : > { %1947 = vmatprep.subr.bf16.mxu0 %v3474_v11  ;;  %1988 = vmatprep.subr.bf16.mxu1 %v3477_v12 }
 0x2e0   : > { %1948 = vmatpush1.bf16.msra.mxu0 %v3482_v13  ;;  %1989 = vmatpush1.bf16.msra.mxu1 %v3485_v14 }
 0x2e1   : > { %1949 = vmatprep.subr.bf16.mxu0 %v3490_v15  ;;  %1990 = vmatprep.subr.bf16.mxu1 %v3493_v16 }
 0x2e4   : > { %1950 = vmatpush1.bf16.msra.mxu0 %v3498_v17  ;;  %1991 = vmatpush1.bf16.msra.mxu1 %v3501_v18 }
 0x2e5   : > { %1951 = vmatprep.subr.bf16.mxu0 %v3506_v19  ;;  %1992 = vmatprep.subr.bf16.mxu1 %v3509_v20 }
 0x2e8   : > { %1952 = vmatpush1.bf16.msra.mxu0 %v3514_v21  ;;  %1993 = vmatpush1.bf16.msra.mxu1 %v3517_v22 }
 0x2e9   : > { %2071 = vmatprep.subr.bf16.mxu0 %v3388_v53  ;;  %2112 = vmatprep.subr.bf16.mxu1 %v3391_v54 }
 0x39e   : > { %v1837_v41 = vpop.f32.mrb[40].mxu0  ;;  %v1878_v44 = vpop.f32.mrb[40].mxu1 }
 0x39f   : > { %v1839_v36 = vpop.f32.mrb[41].mxu0  ;;  %v1880_v49 = vpop.f32.mrb[41].mxu1 }
 0x3a0   : > { %v1889_v38 = vcombine.low %v1837_v41, %v1839_v36  ;;  %v1890_v50 = vcombine.low %v1878_v44, %v1880_v49  ;;  %v1841_v51 = vpop.f32.mrb[42].mxu0  ;;  %v1882_v52 = vpop.f32.mrb[42].mxu1 }
 0x3a1   : > { %v1842_v55 = vpop.f32.mrb[43].mxu0  ;;  %v1883_v23 = vpop.f32.mrb[43].mxu1  ;;  %v3775_v52 = vld [vmem:[%s3213_s5] ss:$16 sps:$4 sm:$0xff]  }
 0x3a2   : > { %v1897_v24 = vrot.slane %v1889_v38, %v3574_v46  ;;  %v1904_v25 = vrot.slane %v1890_v50, %v3574_v46  ;;  %v3779_v55 = vld [vmem:[%s3213_s5 + $0x8] ss:$16 sps:$4 sm:$0xff]   ;;  %v3783_v23 = vld [vmem:[%s3213_s5 + $0x24] ss:$16 sps:$4 sm:$0xff]  }
 0x3a4   : > { %v1905_v27 = vcombine.low %v1897_v24, %v1904_v25  ;;  %v3793_v24 = vld [vmem:[%s3213_s5 + $0x20] ss:$16 sps:$4 sm:$0xff]   ;;  %v3797_v25 = vld [vmem:[%s3213_s5 + $0x28] ss:$16 sps:$4 sm:$0xff]  }
 0x3a6   : > { %v1907_v29 = vadd.f32 %v1905_v27, %v1801_v28  ;;  %v3801_v27 = vld [vmem:[%s3213_s5 + $0x44] ss:$16 sps:$4 sm:$0xff]   ;;  %v3805_v28 = vld [vmem:[%s3213_s5 + $0x4c] ss:$16 sps:$4 sm:$0xff]  }
 0x3a8   : > { %v2817_v26 = vmul.f32 -1.442695, %v1907_v29  ;;  %v1915_v32 = vrot.slane %v1907_v29, 6  ;;  %v3809_v29 = vld [vmem:[%s3213_s5 + $0x40] ss:$16 sps:$4 sm:$0xff]  }
 0x3aa   : > { %2964 = vpow2.f32 %v2817_v26  ;;  %v3813_v26 = vld [vmem:[%s3213_s5 + $0x48] ss:$16 sps:$4 sm:$0xff]  }
 0x3b4   : > { %v2965_v30 = vpop.eup %2964 }
 0x3b5   : > { %v1911_v31 = vadd.f32 1.0, %v2965_v30  ;;  %v3817_v30 = vld [vmem:[%s3213_s5 + $0x64] ss:$16 sps:$4 sm:$0xff]  }
 0x3b7   : > { %2966 = vrcp.f32 %v1911_v31  ;;  %v3821_v31 = vld [vmem:[%s3213_s5 + $0x6c] ss:$16 sps:$4 sm:$0xff]  }
 0x3b8   : > { %2968 = vtanh.f32 %v1915_v32  ;;  %v3825_v32 = vld [vmem:[%s3213_s5 + $0x60] ss:$16 sps:$4 sm:$0xff]  }
 0x3c1   : > { %v2967_v33 = vpop.eup %2966 }
 0x3c2   : > { %v1919_v37 = vrot.slane %v2967_v33, 2  ;;  %v2969_v39 = vpop.eup %2968  ;;  %v1925_v35 = vrot.slane %v2967_v33, 4 }
 0x3c3   : > { %v1922_v43 = vmul.f32 %v2969_v39, %v2967_v33  ;;  %v3829_v33 = vld [vmem:[%s3213_s5 + $0x68] ss:$16 sps:$4 sm:$0xff]   ;;  %v3837_v39 = vld [vmem:[%s3213_s5 + $0x8c] ss:$16 sps:$4 sm:$0xff]  }
 0x3c4   : > { %v1921_v42 = vmul.f32 %v1919_v37, %v3673_v40  ;;  %v3833_v37 = vld [vmem:[%s3213_s5 + $0x84] ss:$16 sps:$4 sm:$0xff]  }
 0x3c6   : > { %v3718_v34 = vadd.f32 %v1922_v43, %v1921_v42  ;;  %v3841_v42 = vld [vmem:[%s3213_s5 + $0x80] ss:$16 sps:$4 sm:$0xff]   ;;  %v3845_v43 = vld [vmem:[%s3213_s5 + $0x88] ss:$16 sps:$4 sm:$0xff]  }
 0x3c8   : > { %2970 = vtanh.f32 %v3718_v34 }
 0x3d2   : > { %v2971_v45 = vpop.eup %2970 }
 0x3d3   : > { %v3721_v48 = vmul.f32 %v2971_v45, %v1925_v35  ;;  %v3853_v35 = vld [vmem:[%s3213_s5 + $0xac] ss:$16 sps:$4 sm:$0xff]   ;;  %v3857_v45 = vld [vmem:[%s3213_s5 + $0xa0] ss:$16 sps:$4 sm:$0xff]  }
 0x3d5   : > { %v1928_v41 = vmax.f32 %v3677_v47, %v3721_v48  ;;  %v1936_v44 = vpack.c.bf16 %v3721_v48, %v3721_v48  ;;  %v3787_v47 = vld [vmem:[%s3213_s5 + $0x2c] ss:$16 sps:$4 sm:$0xff]   ;;  %v3861_v48 = vld [vmem:[%s3213_s5 + $0xa8] ss:$16 sps:$4 sm:$0xff]  }
 0x3d7   : > { %1970 = vmatmul.mubr.bf16.vlgmr.msra.gmra.mrb[44].mxu0 %v1936_v44  ;;  %2011 = vmatmul.mubr.bf16.vlgmr.msra.gmra.mrb[44].mxu1 %v1936_v44  ;;  %v3877_v44 = vld [vmem:[%s3213_s5 + $0xc] ss:$16 sps:$4 sm:$0xff]  }
 0x3d8   : > { %2072 = vmatpush1.bf16.msra.mxu0 %v3398_v56  ;;  %2113 = vmatpush1.bf16.msra.mxu1 %v3401_v57 }
 0x3d9   : > { %2073 = vmatprep.subr.bf16.mxu0 %v3406_v58  ;;  %2114 = vmatprep.subr.bf16.mxu1 %v3409_v59 }
 0x3da   : > { %2103 = vmatprep.mubr.bf16.mxu0 %v3068_v2  ;;  %2144 = vmatprep.mubr.bf16.mxu1 %v3068_v2 }
 0x3dc   : > { %2074 = vmatpush1.bf16.msra.mxu0 %v3416_v60  ;;  %2115 = vmatpush1.bf16.msra.mxu1 %v3419_v61 }
 0x3dd   : > { %2075 = vmatprep.subr.bf16.mxu0 %v3424_v62  ;;  %2116 = vmatprep.subr.bf16.mxu1 %v3427_v63 }
 0x3e0   : > { %2076 = vmatpush1.bf16.msra.mxu0 %v3434_v0  ;;  %2117 = vmatpush1.bf16.msra.mxu1 %v3437_v1 }
 0x3e1   : > { %2077 = vmatprep.subr.bf16.mxu0 %v3442_v3  ;;  %2118 = vmatprep.subr.bf16.mxu1 %v3445_v4 }
 0x3e4   : > { %2078 = vmatpush1.bf16.msra.mxu0 %v3450_v5  ;;  %2119 = vmatpush1.bf16.msra.mxu1 %v3453_v6 }
 0x3e5   : > { %2079 = vmatprep.subr.bf16.mxu0 %v3458_v7  ;;  %2120 = vmatprep.subr.bf16.mxu1 %v3461_v8 }
 0x3e8   : > { %2080 = vmatpush1.bf16.msra.mxu0 %v3466_v9  ;;  %2121 = vmatpush1.bf16.msra.mxu1 %v3469_v10 }
 0x3e9   : > { %2081 = vmatprep.subr.bf16.mxu0 %v3474_v11  ;;  %2122 = vmatprep.subr.bf16.mxu1 %v3477_v12 }
 0x3ec   : > { %2082 = vmatpush1.bf16.msra.mxu0 %v3482_v13  ;;  %2123 = vmatpush1.bf16.msra.mxu1 %v3485_v14 }
 0x3ed   : > { %2083 = vmatprep.subr.bf16.mxu0 %v3490_v15  ;;  %2124 = vmatprep.subr.bf16.mxu1 %v3493_v16 }
 0x3f0   : > { %2084 = vmatpush1.bf16.msra.mxu0 %v3498_v17  ;;  %2125 = vmatpush1.bf16.msra.mxu1 %v3501_v18 }
 0x3f1   : > { %2085 = vmatprep.subr.bf16.mxu0 %v3506_v19  ;;  %2126 = vmatprep.subr.bf16.mxu1 %v3509_v20 }
 0x3f4   : > { %2086 = vmatpush1.bf16.msra.mxu0 %v3514_v21  ;;  %2127 = vmatpush1.bf16.msra.mxu1 %v3517_v22 }
 0x3f5   : > { %2205 = vmatprep.subr.bf16.mxu0 %v3388_v53  ;;  %2246 = vmatprep.subr.bf16.mxu1 %v3391_v54  ;;  %v1935_v54 = vld [vmem:[%s1934_s6] sm:$0xff] }
 0x4aa   : > { %v1971_v56 = vpop.f32.mrb[44].mxu0  ;;  %v2012_v57 = vpop.f32.mrb[44].mxu1 }
 0x4ab   : > { %v1973_v58 = vpop.f32.mrb[45].mxu0  ;;  %v2014_v59 = vpop.f32.mrb[45].mxu1 }
 0x4ac   : > { %v2023_v60 = vcombine.low %v1971_v56, %v1973_v58  ;;  %v2024_v61 = vcombine.low %v2012_v57, %v2014_v59  ;;  %v1975_v62 = vpop.f32.mrb[46].mxu0  ;;  %v2016_v63 = vpop.f32.mrb[46].mxu1 }
 0x4ad   : > { %v1976_v0 = vpop.f32.mrb[47].mxu0  ;;  %v2017_v1 = vpop.f32.mrb[47].mxu1 }
 0x4ae   : > { %v2031_v3 = vrot.slane %v2023_v60, %v3574_v46  ;;  %v2038_v53 = vrot.slane %v2024_v61, %v3574_v46  ;;  %v2069_v61 = vld [vmem:[%s2068_s11] sm:$0xff] }
 0x4b0   : > { %v2039_v4 = vcombine.low %v2031_v3, %v2038_v53 }
 0x4b2   : > { %v2041_v5 = vadd.f32 %v2039_v4, %v1935_v54 }
 0x4b4   : > { %v2821_v6 = vmul.f32 -1.442695, %v2041_v5  ;;  %v2049_v9 = vrot.slane %v2041_v5, 6 }
 0x4b6   : > { %2972 = vpow2.f32 %v2821_v6 }
 0x4c0   : > { %v2973_v7 = vpop.eup %2972 }
 0x4c1   : > { %v2045_v8 = vadd.f32 1.0, %v2973_v7 }
 0x4c3   : > { %2974 = vrcp.f32 %v2045_v8 }
 0x4c4   : > { %2976 = vtanh.f32 %v2049_v9 }
 0x4cd   : > { %v2975_v10 = vpop.eup %2974 }
 0x4ce   : > { %v2053_v11 = vrot.slane %v2975_v10, 2  ;;  %v2977_v12 = vpop.eup %2976  ;;  %v2059_v36 = vrot.slane %v2975_v10, 4 }
 0x4cf   : > { %v2056_v14 = vmul.f32 %v2977_v12, %v2975_v10 }
 0x4d0   : > { %v2055_v13 = vmul.f32 %v2053_v11, %v3718_v34  ;;  %v3849_v34 = vld [vmem:[%s3213_s5 + $0xa4] ss:$16 sps:$4 sm:$0xff]  }
 0x4d2   : > { %v3766_v40 = vadd.f32 %v2056_v14, %v2055_v13  ;;  %v3919_v13 = vld [vmem:[%s3213_s5 + $0xc4] ss:$16 sps:$4 sm:$0xff]   ;;  %v3923_v14 = vld [vmem:[%s3213_s5 + $0xcc] ss:$16 sps:$4 sm:$0xff]  }
 0x4d4   : > { %2978 = vtanh.f32 %v3766_v40 }
 0x4de   : > { %v2979_v49 = vpop.eup %2978 }
 0x4df   : > { %v2061_v38 = vmul.f32 %v2979_v49, %v2059_v36  ;;  %v3931_v36 = vld [vmem:[%s3213_s5 + $0xc8] ss:$16 sps:$4 sm:$0xff]   ;;  %v3935_v49 = vld [vmem:[%s3213_s5 + $0xe4] ss:$16 sps:$4 sm:$0xff]  }
 0x4e1   : > { %v3772_v50 = vmax.f32 %v1928_v41, %v2061_v38  ;;  %v2070_v51 = vpack.c.bf16 %v2061_v38, %v2061_v38  ;;  %v3873_v41 = vld [vmem:[%s3213_s5 + $0x4] ss:$16 sps:$4 sm:$0xff]   ;;  %v3939_v38 = vld [vmem:[%s3213_s5 + $0xec] ss:$16 sps:$4 sm:$0xff]  }
 0x4e3   : > { %2104 = vmatmul.mubr.bf16.vlgmr.msra.gmra.mrb[48].mxu0 %v2070_v51  ;;  %2145 = vmatmul.mubr.bf16.vlgmr.msra.gmra.mrb[48].mxu1 %v2070_v51  ;;  %v3943_v51 = vld [vmem:[%s3213_s5 + $0xe0] ss:$16 sps:$4 sm:$0xff]  }
 0x4e4   : > { %2206 = vmatpush1.bf16.msra.mxu0 %v3775_v52  ;;  %2247 = vmatpush1.bf16.msra.mxu1 %v3779_v55 }
 0x4e5   : > { %2207 = vmatprep.subr.bf16.mxu0 %v3783_v23  ;;  %2248 = vmatprep.subr.bf16.mxu1 %v3787_v47 }
 0x4e6   : > { %2237 = vmatprep.mubr.bf16.mxu0 %v3068_v2  ;;  %2278 = vmatprep.mubr.bf16.mxu1 %v3068_v2 }
 0x4e8   : > { %2208 = vmatpush1.bf16.msra.mxu0 %v3793_v24  ;;  %2249 = vmatpush1.bf16.msra.mxu1 %v3797_v25 }
 0x4e9   : > { %2209 = vmatprep.subr.bf16.mxu0 %v3801_v27  ;;  %2250 = vmatprep.subr.bf16.mxu1 %v3805_v28 }
 0x4ec   : > { %2210 = vmatpush1.bf16.msra.mxu0 %v3809_v29  ;;  %2251 = vmatpush1.bf16.msra.mxu1 %v3813_v26 }
 0x4ed   : > { %2211 = vmatprep.subr.bf16.mxu0 %v3817_v30  ;;  %2252 = vmatprep.subr.bf16.mxu1 %v3821_v31 }
 0x4f0   : > { %2212 = vmatpush1.bf16.msra.mxu0 %v3825_v32  ;;  %2253 = vmatpush1.bf16.msra.mxu1 %v3829_v33 }
 0x4f1   : > { %2213 = vmatprep.subr.bf16.mxu0 %v3833_v37  ;;  %2254 = vmatprep.subr.bf16.mxu1 %v3837_v39 }
 0x4f4   : > { %2214 = vmatpush1.bf16.msra.mxu0 %v3841_v42  ;;  %2255 = vmatpush1.bf16.msra.mxu1 %v3845_v43 }
 0x4f5   : > { %2215 = vmatprep.subr.bf16.mxu0 %v3849_v34  ;;  %2256 = vmatprep.subr.bf16.mxu1 %v3853_v35 }
 0x4f8   : > { %2216 = vmatpush1.bf16.msra.mxu0 %v3857_v45  ;;  %2257 = vmatpush1.bf16.msra.mxu1 %v3861_v48 }
 0x4f9   : > { %2217 = vmatprep.subr.bf16.mxu0 %v3490_v15  ;;  %2258 = vmatprep.subr.bf16.mxu1 %v3493_v16 }
 0x4fc   : > { %2218 = vmatpush1.bf16.msra.mxu0 %v3498_v17  ;;  %2259 = vmatpush1.bf16.msra.mxu1 %v3501_v18 }
 0x4fd   : > { %2219 = vmatprep.subr.bf16.mxu0 %v3506_v19  ;;  %2260 = vmatprep.subr.bf16.mxu1 %v3509_v20 }
 0x500   : > { %2220 = vmatpush1.bf16.msra.mxu0 %v3514_v21  ;;  %2261 = vmatpush1.bf16.msra.mxu1 %v3517_v22 }
 0x501   : > { %2338 = vmatprep.subr.bf16.mxu0 %v3873_v41  ;;  %2379 = vmatprep.subr.bf16.mxu1 %v3877_v44 }
 0x5b6   : > { %v2105_v15 = vpop.f32.mrb[48].mxu0  ;;  %v2146_v16 = vpop.f32.mrb[48].mxu1 }
 0x5b7   : > { %v2107_v17 = vpop.f32.mrb[49].mxu0  ;;  %v2148_v18 = vpop.f32.mrb[49].mxu1 }
 0x5b8   : > { %v2157_v19 = vcombine.low %v2105_v15, %v2107_v17  ;;  %v2158_v20 = vcombine.low %v2146_v16, %v2148_v18  ;;  %v2109_v21 = vpop.f32.mrb[50].mxu0  ;;  %v2150_v22 = vpop.f32.mrb[50].mxu1  ;;  %v3947_v15 = vld [vmem:[%s3213_s5 + $0xe8] ss:$16 sps:$4 sm:$0xff]  }
 0x5b9   : > { %v2110_v56 = vpop.f32.mrb[51].mxu0  ;;  %v2151_v57 = vpop.f32.mrb[51].mxu1 }
 0x5ba   : > { %v2165_v58 = vrot.slane %v2157_v19, %v3574_v46  ;;  %v2172_v59 = vrot.slane %v2158_v20, %v3574_v46 }
 0x5bc   : > { %v2173_v60 = vcombine.low %v2165_v58, %v2172_v59 }
 0x5be   : > { %v2175_v62 = vadd.f32 %v2173_v60, %v2069_v61 }
 0x5c0   : > { %v2825_v63 = vmul.f32 -1.442695, %v2175_v62  ;;  %v2183_v3 = vrot.slane %v2175_v62, 6 }
 0x5c2   : > { %2980 = vpow2.f32 %v2825_v63 }
 0x5cc   : > { %v2981_v0 = vpop.eup %2980 }
 0x5cd   : > { %v2179_v1 = vadd.f32 1.0, %v2981_v0 }
 0x5cf   : > { %2982 = vrcp.f32 %v2179_v1 }
 0x5d0   : > { %2984 = vtanh.f32 %v2183_v3 }
 0x5d9   : > { %v2983_v53 = vpop.eup %2982 }
 0x5da   : > { %v2187_v4 = vrot.slane %v2983_v53, 2  ;;  %v2985_v54 = vpop.eup %2984  ;;  %v2193_v8 = vrot.slane %v2983_v53, 4 }
 0x5db   : > { %v2190_v6 = vmul.f32 %v2985_v54, %v2983_v53 }
 0x5dc   : > { %v2189_v5 = vmul.f32 %v2187_v4, %v3766_v40  ;;  %v3927_v40 = vld [vmem:[%s3213_s5 + $0xc0] ss:$16 sps:$4 sm:$0xff]   ;;  %s2202_s5 = scalar_lea.vmem [#allocation2], %s2845_s20 }
 0x5de   : > { %v3885_v7 = vadd.f32 %v2190_v6, %v2189_v5 }
 0x5e0   : > { %2986 = vtanh.f32 %v3885_v7 }
 0x5ea   : > { %v2987_v9 = vpop.eup %2986 }
 0x5eb   : > { %v3888_v10 = vmul.f32 %v2987_v9, %v2193_v8 }
 0x5ed   : > { %v2196_v11 = vmax.f32 %v3772_v50, %v3888_v10  ;;  %v2204_v12 = vpack.c.bf16 %v3888_v10, %v3888_v10 }
 0x5ef   : > { %2238 = vmatmul.mubr.bf16.vlgmr.msra.gmra.mrb[52].mxu0 %v2204_v12  ;;  %2279 = vmatmul.mubr.bf16.vlgmr.msra.gmra.mrb[52].mxu1 %v2204_v12 }
 0x5f0   : > { %2339 = vmatpush1.bf16.msra.mxu0 %v3775_v52  ;;  %2380 = vmatpush1.bf16.msra.mxu1 %v3779_v55 }
 0x5f1   : > { %2340 = vmatprep.subr.bf16.mxu0 %v3783_v23  ;;  %2381 = vmatprep.subr.bf16.mxu1 %v3787_v47 }
 0x5f2   : > { %2370 = vmatprep.mubr.bf16.mxu0 %v3068_v2  ;;  %2411 = vmatprep.mubr.bf16.mxu1 %v3068_v2 }
 0x5f4   : > { %2341 = vmatpush1.bf16.msra.mxu0 %v3793_v24  ;;  %2382 = vmatpush1.bf16.msra.mxu1 %v3797_v25 }
 0x5f5   : > { %2342 = vmatprep.subr.bf16.mxu0 %v3801_v27  ;;  %2383 = vmatprep.subr.bf16.mxu1 %v3805_v28 }
 0x5f8   : > { %2343 = vmatpush1.bf16.msra.mxu0 %v3809_v29  ;;  %2384 = vmatpush1.bf16.msra.mxu1 %v3813_v26 }
 0x5f9   : > { %2344 = vmatprep.subr.bf16.mxu0 %v3817_v30  ;;  %2385 = vmatprep.subr.bf16.mxu1 %v3821_v31 }
 0x5fc   : > { %2345 = vmatpush1.bf16.msra.mxu0 %v3825_v32  ;;  %2386 = vmatpush1.bf16.msra.mxu1 %v3829_v33 }
 0x5fd   : > { %2346 = vmatprep.subr.bf16.mxu0 %v3833_v37  ;;  %2387 = vmatprep.subr.bf16.mxu1 %v3837_v39 }
 0x600   : > { %2347 = vmatpush1.bf16.msra.mxu0 %v3841_v42  ;;  %2388 = vmatpush1.bf16.msra.mxu1 %v3845_v43 }
 0x601   : > { %2348 = vmatprep.subr.bf16.mxu0 %v3849_v34  ;;  %2389 = vmatprep.subr.bf16.mxu1 %v3853_v35 }
 0x604   : > { %2349 = vmatpush1.bf16.msra.mxu0 %v3857_v45  ;;  %2390 = vmatpush1.bf16.msra.mxu1 %v3861_v48 }
 0x605   : > { %2350 = vmatprep.subr.bf16.mxu0 %v3919_v13  ;;  %2391 = vmatprep.subr.bf16.mxu1 %v3923_v14 }
 0x608   : > { %2351 = vmatpush1.bf16.msra.mxu0 %v3927_v40  ;;  %2392 = vmatpush1.bf16.msra.mxu1 %v3931_v36 }
 0x609   : > { %2352 = vmatprep.subr.bf16.mxu0 %v3935_v49  ;;  %2393 = vmatprep.subr.bf16.mxu1 %v3939_v38 }
 0x60c   : > { %2353 = vmatpush1.bf16.msra.mxu0 %v3943_v51  ;;  %2394 = vmatpush1.bf16.msra.mxu1 %v3947_v15 }
 0x60d   : > { %2470 = vmatprep.subr.bf16.mxu0 %v3873_v41  ;;  %2511 = vmatprep.subr.bf16.mxu1 %v3877_v44  ;;  %v2203_v44 = vld [vmem:[%s2202_s5] sm:$0xff] }
 0x6c2   : > { %v2239_v16 = vpop.f32.mrb[52].mxu0  ;;  %v2280_v17 = vpop.f32.mrb[52].mxu1 }
 0x6c3   : > { %v2241_v18 = vpop.f32.mrb[53].mxu0  ;;  %v2282_v19 = vpop.f32.mrb[53].mxu1 }
 0x6c4   : > { %v2291_v20 = vcombine.low %v2239_v16, %v2241_v18  ;;  %v2292_v21 = vcombine.low %v2280_v17, %v2282_v19  ;;  %v2243_v22 = vpop.f32.mrb[54].mxu0  ;;  %v2284_v56 = vpop.f32.mrb[54].mxu1 }
 0x6c5   : > { %v2244_v57 = vpop.f32.mrb[55].mxu0  ;;  %v2285_v58 = vpop.f32.mrb[55].mxu1 }
 0x6c6   : > { %v2299_v59 = vrot.slane %v2291_v20, %v3574_v46  ;;  %v2306_v41 = vrot.slane %v2292_v21, %v3574_v46 }
 0x6c8   : > { %v2307_v60 = vcombine.low %v2299_v59, %v2306_v41  ;;  %v2468_v59 = vld [vmem:[%s2467_s26] sm:$0xff] }
 0x6ca   : > { %v2309_v61 = vadd.f32 %v2307_v60, %v2203_v44 }
 0x6cc   : > { %v2829_v62 = vmul.f32 -1.442695, %v2309_v61  ;;  %v2317_v1 = vrot.slane %v2309_v61, 6 }
 0x6ce   : > { %2988 = vpow2.f32 %v2829_v62 }
 0x6d8   : > { %v2989_v63 = vpop.eup %2988 }
 0x6d9   : > { %v2313_v0 = vadd.f32 1.0, %v2989_v63 }
 0x6db   : > { %2990 = vrcp.f32 %v2313_v0 }
 0x6dc   : > { %2992 = vtanh.f32 %v2317_v1 }
 0x6e5   : > { %v2991_v3 = vpop.eup %2990 }
 0x6e6   : > { %v2321_v53 = vrot.slane %v2991_v3, 2  ;;  %v2993_v4 = vpop.eup %2992  ;;  %v2327_v8 = vrot.slane %v2991_v3, 4 }
 0x6e7   : > { %v2324_v5 = vmul.f32 %v2993_v4, %v2991_v3 }
 0x6e8   : > { %v2323_v54 = vmul.f32 %v2321_v53, %v3885_v7 }
 0x6ea   : > { %v3957_v6 = vadd.f32 %v2324_v5, %v2323_v54 }
 0x6ec   : > { %2994 = vtanh.f32 %v3957_v6 }
 0x6f6   : > { %v2995_v9 = vpop.eup %2994 }
 0x6f7   : > { %v2329_v12 = vmul.f32 %v2995_v9, %v2327_v8 }
 0x6f9   : > { %v3963_v16 = vmax.f32 %v2196_v11, %v2329_v12  ;;  %v2337_v17 = vpack.c.bf16 %v2329_v12, %v2329_v12 }
 0x6fb   : > { %2371 = vmatmul.mubr.bf16.vlgmr.msra.gmra.mrb[56].mxu0 %v2337_v17  ;;  %2412 = vmatmul.mubr.bf16.vlgmr.msra.gmra.mrb[56].mxu1 %v2337_v17 }
 0x6fc   : > { %2471 = vmatpush1.bf16.msra.mxu0 %v3775_v52  ;;  %2512 = vmatpush1.bf16.msra.mxu1 %v3779_v55 }
 0x6fd   : > { %2472 = vmatprep.subr.bf16.mxu0 %v3783_v23  ;;  %2513 = vmatprep.subr.bf16.mxu1 %v3787_v47 }
 0x6fe   : > { %2502 = vmatprep.mubr.bf16.mxu0 %v3068_v2  ;;  %2543 = vmatprep.mubr.bf16.mxu1 %v3068_v2 }
 0x700   : > { %2473 = vmatpush1.bf16.msra.mxu0 %v3793_v24  ;;  %2514 = vmatpush1.bf16.msra.mxu1 %v3797_v25 }
 0x701   : > { %2474 = vmatprep.subr.bf16.mxu0 %v3801_v27  ;;  %2515 = vmatprep.subr.bf16.mxu1 %v3805_v28 }
 0x704   : > { %2475 = vmatpush1.bf16.msra.mxu0 %v3809_v29  ;;  %2516 = vmatpush1.bf16.msra.mxu1 %v3813_v26 }
 0x705   : > { %2476 = vmatprep.subr.bf16.mxu0 %v3817_v30  ;;  %2517 = vmatprep.subr.bf16.mxu1 %v3821_v31  ;;  %v2336_v31 = vld [vmem:[%s2335_s25] sm:$0xff] }
 0x708   : > { %2477 = vmatpush1.bf16.msra.mxu0 %v3825_v32  ;;  %2518 = vmatpush1.bf16.msra.mxu1 %v3829_v33 }
 0x709   : > { %2478 = vmatprep.subr.bf16.mxu0 %v3833_v37  ;;  %2519 = vmatprep.subr.bf16.mxu1 %v3837_v39 }
 0x70c   : > { %2479 = vmatpush1.bf16.msra.mxu0 %v3841_v42  ;;  %2520 = vmatpush1.bf16.msra.mxu1 %v3845_v43 }
 0x70d   : > { %2480 = vmatprep.subr.bf16.mxu0 %v3849_v34  ;;  %2521 = vmatprep.subr.bf16.mxu1 %v3853_v35 }
 0x710   : > { %2481 = vmatpush1.bf16.msra.mxu0 %v3857_v45  ;;  %2522 = vmatpush1.bf16.msra.mxu1 %v3861_v48 }
 0x711   : > { %2482 = vmatprep.subr.bf16.mxu0 %v3919_v13  ;;  %2523 = vmatprep.subr.bf16.mxu1 %v3923_v14 }
 0x714   : > { %2483 = vmatpush1.bf16.msra.mxu0 %v3927_v40  ;;  %2524 = vmatpush1.bf16.msra.mxu1 %v3931_v36 }
 0x715   : > { %2484 = vmatprep.subr.bf16.mxu0 %v3935_v49  ;;  %2525 = vmatprep.subr.bf16.mxu1 %v3939_v38 }
 0x718   : > { %2485 = vmatpush1.bf16.msra.mxu0 %v3943_v51  ;;  %2526 = vmatpush1.bf16.msra.mxu1 %v3947_v15 }
 0x7ce   : > { %v2372_v2 = vpop.f32.mrb[56].mxu0  ;;  %v2413_v50 = vpop.f32.mrb[56].mxu1 }
 0x7cf   : > { %v2374_v52 = vpop.f32.mrb[57].mxu0  ;;  %v2415_v55 = vpop.f32.mrb[57].mxu1 }
 0x7d0   : > { %v2424_v23 = vcombine.low %v2372_v2, %v2374_v52  ;;  %v2425_v47 = vcombine.low %v2413_v50, %v2415_v55  ;;  %v2376_v24 = vpop.f32.mrb[58].mxu0  ;;  %v2417_v25 = vpop.f32.mrb[58].mxu1 }
 0x7d1   : > { %v2377_v27 = vpop.f32.mrb[59].mxu0  ;;  %v2418_v28 = vpop.f32.mrb[59].mxu1 }
 0x7d2   : > { %v2432_v29 = vrot.slane %v2424_v23, %v3574_v46  ;;  %v2439_v26 = vrot.slane %v2425_v47, %v3574_v46 }
 0x7d4   : > { %v2440_v30 = vcombine.low %v2432_v29, %v2439_v26 }
 0x7d6   : > { %v2442_v32 = vadd.f32 %v2440_v30, %v2336_v31 }
 0x7d8   : > { %v2832_v33 = vmul.f32 -1.442695, %v2442_v32  ;;  %v2450_v42 = vrot.slane %v2442_v32, 6 }
 0x7da   : > { %2996 = vpow2.f32 %v2832_v33 }
 0x7e4   : > { %v2997_v37 = vpop.eup %2996 }
 0x7e5   : > { %v2446_v39 = vadd.f32 1.0, %v2997_v37 }
 0x7e7   : > { %2998 = vrcp.f32 %v2446_v39 }
 0x7e8   : > { %3000 = vtanh.f32 %v2450_v42 }
 0x7f1   : > { %v2999_v43 = vpop.eup %2998 }
 0x7f2   : > { %v2454_v34 = vrot.slane %v2999_v43, 2  ;;  %v3001_v35 = vpop.eup %3000  ;;  %v2460_v10 = vrot.slane %v2999_v43, 4 }
 0x7f3   : > { %v2457_v48 = vmul.f32 %v3001_v35, %v2999_v43 }
 0x7f4   : > { %v2456_v45 = vmul.f32 %v2454_v34, %v3957_v6 }
 0x7f6   : > { %v2458_v7 = vadd.f32 %v2457_v48, %v2456_v45 }
 0x7f8   : > { %3002 = vtanh.f32 %v2458_v7 }
 0x802   : > { %v3003_v11 = vpop.eup %3002 }
 0x803   : > { %v2462_v13 = vmul.f32 %v3003_v11, %v2460_v10 }
 0x805   : > { %v2463_v14 = vmax.f32 %v3963_v16, %v2462_v13  ;;  %v2469_v40 = vpack.c.bf16 %v2462_v13, %v2462_v13 }
 0x807   : > { %2503 = vmatmul.mubr.bf16.vlgmr.msra.gmra.mrb[60].mxu0 %v2469_v40  ;;  %2544 = vmatmul.mubr.bf16.vlgmr.msra.gmra.mrb[60].mxu1 %v2469_v40 }
 0x8da   : > { %v2504_v36 = vpop.f32.mrb[60].mxu0  ;;  %v2545_v49 = vpop.f32.mrb[60].mxu1 }
 0x8db   : > { %v2506_v38 = vpop.f32.mrb[61].mxu0  ;;  %v2547_v51 = vpop.f32.mrb[61].mxu1 }
 0x8dc   : > { %v2556_v15 = vcombine.low %v2504_v36, %v2506_v38  ;;  %v2557_v18 = vcombine.low %v2545_v49, %v2547_v51  ;;  %v2508_v19 = vpop.f32.mrb[62].mxu0  ;;  %v2549_v20 = vpop.f32.mrb[62].mxu1 }
 0x8dd   : > { %v2509_v21 = vpop.f32.mrb[63].mxu0  ;;  %v2550_v22 = vpop.f32.mrb[63].mxu1 }
 0x8de   : > { %v2564_v56 = vrot.slane %v2556_v15, %v3574_v46  ;;  %v2571_v57 = vrot.slane %v2557_v18, %v3574_v46 }
 0x8e0   : > { %v2572_v58 = vcombine.low %v2564_v56, %v2571_v57 }
 0x8e2   : > { %v2574_v41 = vadd.f32 %v2572_v58, %v2468_v59 }
 0x8e4   : > { %v2835_v60 = vmul.f32 -1.442695, %v2574_v41  ;;  %v2582_v62 = vrot.slane %v2574_v41, 6 }
 0x8e6   : > { %3004 = vpow2.f32 %v2835_v60 }
 0x8f0   : > { %v3005_v44 = vpop.eup %3004 }
 0x8f1   : > { %v2578_v61 = vadd.f32 1.0, %v3005_v44 }
 0x8f3   : > { %3006 = vrcp.f32 %v2578_v61 }
 0x8f4   : > { %3008 = vtanh.f32 %v2582_v62 }
 0x8fd   : > { %v3007_v63 = vpop.eup %3006 }
 0x8fe   : > { %v2586_v0 = vrot.slane %v3007_v63, 2  ;;  %v3009_v1 = vpop.eup %3008  ;;  %v2592_v46 = vrot.slane %v3007_v63, 4 }
 0x8ff   : > { %v2589_v53 = vmul.f32 %v3009_v1, %v3007_v63 }
 0x900   : > { %v2588_v3 = vmul.f32 %v2586_v0, %v2458_v7 }
 0x902   : > { %v2590_v4 = vadd.f32 %v2589_v53, %v2588_v3 }
 0x904   : > { %3010 = vtanh.f32 %v2590_v4  ;;  %2597 = vst [vmem:[#allocation4] sm:$0x3] %v2590_v4 }
 0x90e   : > { %v3011_v54 = vpop.eup %3010 }
 0x90f   : > { %v2594_v5 = vmul.f32 %v3011_v54, %v2592_v46 }
 0x911   : > { %v2595_v6 = vmax.f32 %v2463_v14, %v2594_v5  ;;  %2596 = vst [vmem:[#allocation3] sm:$0x3] %v2594_v5 }
 0x913   : > { %2598 = vst [vmem:[#allocation5] sm:$0x3] %v2595_v6  ;;  %2602 = vst [vmem:[%s296_s29] sm:$0x3] %v2595_v6 }
 0x914 PF: > { %s14_s17 = sadd.s32 1, %s3066_s17   ;;  %s4024_s15 = smov %s3062_s16 }
 0x915   : > { %p11_p5 = scmp.ge.s32.totalorder %s14_s17, 4   ;;  %s4025_s16 = smov %s4027_s18 }
 0x917   :  { %13 = sbr.rel (!%p11_p5) target bundleno = 2 (0x2), region = 98 }

</bundles_post_ra>
